<compile_context>
chip_gen: v5e
topology: v5e:2x2
jax: 0.10.0
libtpu: 0.0.40
codegen_flags: <defaults>
</compile_context>

<pallas_src>
import jax
import jax.numpy as jnp
from jax import lax
from jax.experimental import pallas as pl
from jax.experimental.pallas import tpu as pltpu


HIDDEN = 512
LANE = 128
ROW_ALIGN = 16          # bf16 sublane packing
DEFAULT_TILE_B = 1024   # amortizes per-grid-step overhead on v6e/v7x
MIN_SPLIT_ROWS = 512    # only force a 2-way split (v7x dual-TC) above this


def _round_up(x, m):
    return ((x + m - 1) // m) * m


def _cdiv(a, b):
    return -(-a // b)


def _choose_tiling(batch, tile_b_max):
    """Adaptive row padding + tile size; >=2 grid steps for large batches (v7x)."""
    b_min = _round_up(max(batch, 1), ROW_ALIGN)
    n_tiles = max(1, _cdiv(b_min, tile_b_max))
    if n_tiles == 1 and b_min >= MIN_SPLIT_ROWS:
        n_tiles = 2                       # feed both v7x TensorCores
    tile_b = _round_up(_cdiv(b_min, n_tiles), ROW_ALIGN)
    b_pad = tile_b * n_tiles
    return b_pad, tile_b, n_tiles


def _make_kernel(n_actions):
    """Kernel body; n_actions is baked in as a static constant."""

    def kernel(x_ref, w1_ref, b1_ref, w2_ref, b2_ref, wh_ref, bh_ref, q_ref):
        # fc1 + leaky_relu(0.01): bf16 operands, f32 MXU accumulation.
        # x_ref is already bf16 at the true feature width (MXU pads K internally).
        h1 = jnp.dot(x_ref[...], w1_ref[...],
                     preferred_element_type=jnp.float32) + b1_ref[...]
        h1 = jnp.where(h1 > 0, h1, 0.01 * h1)

        # fc2 + leaky_relu(0.01)
        h2 = jnp.dot(h1.astype(jnp.bfloat16), w2_ref[...],
                     preferred_element_type=jnp.float32) + b2_ref[...]
        h2 = jnp.where(h2 > 0, h2, 0.01 * h2)

        # Fused heads: one lane-dense (TB, 128) result.
        #   cols [0, n_actions)  -> advantage
        #   col  n_actions       -> value
        #   cols > n_actions     -> padding (ignored via explicit mask below)
        head = jnp.dot(h2.astype(jnp.bfloat16), wh_ref[...],
                       preferred_element_type=jnp.float32) + bh_ref[...]

        value = head[:, n_actions:n_actions + 1]                  # (TB, 1)

        # Explicit column mask: the advantage mean never depends on padded
        # head columns being zero.
        col = lax.broadcasted_iota(jnp.int32, head.shape, 1)
        adv_sum = jnp.sum(jnp.where(col < n_actions, head, 0.0),
                          axis=1, keepdims=True)
        adv_mean = adv_sum * (1.0 / n_actions)

        # Q = V + (A - mean(A)); valid in columns [0, n_actions), the rest is
        # garbage and is sliced away in the wrapper. Full 128-wide unmasked store.
        q_ref[...] = (head - adv_mean + value).astype(q_ref.dtype)

    return kernel


def dueling_dqn_forward(state, kparams, n_actions, *, tile_b=DEFAULT_TILE_B,
                        out_dtype=jnp.float32):
    """state: (B, input_dims) float. kparams: packed kernel params (pack_params)."""
    B, D = state.shape
    assert kparams["w1"].shape[0] == D, "state feature dim must match packed w1"
    head_w = kparams["wh"].shape[1]

    b_pad, tile_b, n_tiles = _choose_tiling(B, tile_b)

    # bf16 state, rows padded only (no 128-lane feature padding).
    x = jnp.zeros((b_pad, D), jnp.bfloat16).at[:B, :].set(
        state.astype(jnp.bfloat16))

    const = lambda i: (0, 0)   # weights/biases: VMEM-resident across batch tiles

    q_pad = pl.pallas_call(
        _make_kernel(n_actions),
        out_shape=jax.ShapeDtypeStruct((b_pad, head_w), out_dtype),
        grid=(n_tiles,),
        in_specs=[
            pl.BlockSpec((tile_b, D), lambda i: (i, 0)),       # state tile (bf16)
            pl.BlockSpec((D, HIDDEN), const),                  # w1 (bf16)
            pl.BlockSpec((1, HIDDEN), const),                  # b1 (f32)
            pl.BlockSpec((HIDDEN, HIDDEN), const),             # w2 (bf16)
            pl.BlockSpec((1, HIDDEN), const),                  # b2 (f32)
            pl.BlockSpec((HIDDEN, head_w), const),             # fused head W (bf16)
            pl.BlockSpec((1, head_w), const),                  # fused head b (f32)
        ],
        out_specs=pl.BlockSpec((tile_b, head_w), lambda i: (i, 0)),
        compiler_params=pltpu.CompilerParams(
            dimension_semantics=("parallel",),      # megacore-shard batch tiles
            vmem_limit_bytes=48 * 1024 * 1024,      # headroom under v7x's 64 MiB
        ),
    )(
        x,
        kparams["w1"], kparams["b1"],
        kparams["w2"], kparams["b2"],
        kparams["wh"], kparams["bh"],
    )
    return q_pad[:B, :n_actions]


def init_params(key, input_dims, n_actions):
    """PyTorch nn.Linear-style init, weights stored as (in_features, out_features)."""

    def linear(k, fan_in, fan_out):
        kw, kb = jax.random.split(k)
        bound = 1.0 / jnp.sqrt(fan_in)
        w = jax.random.uniform(kw, (fan_in, fan_out), jnp.float32, -bound, bound)
        b = jax.random.uniform(kb, (1, fan_out), jnp.float32, -bound, bound)
        return w, b

    k1, k2, k3, k4 = jax.random.split(key, 4)
    w1, b1 = linear(k1, input_dims, HIDDEN)
    w2, b2 = linear(k2, HIDDEN, HIDDEN)
    wv, bv = linear(k3, HIDDEN, 1)
    wa, ba = linear(k4, HIDDEN, n_actions)
    return dict(w1=w1, b1=b1, w2=w2, b2=b2, wv=wv, bv=bv, wa=wa, ba=ba)


def pack_params(p, input_dims, n_actions):
    """Pack f32 params into the kernel layout: fused head, bf16 weights."""
    head_w = max(LANE, _round_up(n_actions + 1, LANE))

    wh = jnp.zeros((HIDDEN, head_w), jnp.float32)
    wh = wh.at[:, :n_actions].set(p["wa"])
    wh = wh.at[:, n_actions].set(p["wv"][:, 0])

    bh = jnp.zeros((1, head_w), jnp.float32)
    bh = bh.at[:, :n_actions].set(p["ba"])
    bh = bh.at[0, n_actions].set(p["bv"][0, 0])

    return dict(
        w1=p["w1"].astype(jnp.bfloat16), b1=p["b1"],
        w2=p["w2"].astype(jnp.bfloat16), b2=p["b2"],
        wh=wh.astype(jnp.bfloat16), bh=bh,
    )


def reference_forward_f32(state, p):
    """Pure-JAX f32 reference replicating the PyTorch forward exactly."""
    leaky = lambda x: jnp.where(x > 0, x, 0.01 * x)
    h1 = leaky(state @ p["w1"] + p["b1"])
    h2 = leaky(h1 @ p["w2"] + p["b2"])
    value = h2 @ p["wv"] + p["bv"]
    adv = h2 @ p["wa"] + p["ba"]
    return value + (adv - jnp.mean(adv, axis=1, keepdims=True))


def reference_forward_bf16(state, p):
    """Reference using the same bf16-operand / f32-accumulate scheme as the kernel."""
    bf = lambda a: a.astype(jnp.bfloat16)
    leaky = lambda x: jnp.where(x > 0, x, 0.01 * x)
    h1 = leaky(jnp.dot(bf(state), bf(p["w1"]),
                       preferred_element_type=jnp.float32) + p["b1"])
    h2 = leaky(jnp.dot(bf(h1), bf(p["w2"]),
                       preferred_element_type=jnp.float32) + p["b2"])
    value = jnp.dot(bf(h2), bf(p["wv"]), preferred_element_type=jnp.float32) + p["bv"]
    adv = jnp.dot(bf(h2), bf(p["wa"]), preferred_element_type=jnp.float32) + p["ba"]
    return value + (adv - jnp.mean(adv, axis=1, keepdims=True))


if __name__ == "__main__":
    key = jax.random.PRNGKey(0)
    k_params, k_state = jax.random.split(key)

    batch = 2
    input_dims = 8      # e.g. LunarLander-style observation vector
    n_actions = 4

    raw_params = init_params(k_params, input_dims, n_actions)
    kparams = pack_params(raw_params, input_dims, n_actions)
    state = jax.random.normal(k_state, (batch, input_dims), jnp.float32)

    q = dueling_dqn_forward(state, kparams, n_actions)
    q = jax.block_until_ready(q)
    assert q.shape == (batch, n_actions)

    # Tight check vs. a reference that uses the same bf16-operand scheme.
    q_ref_bf16 = reference_forward_bf16(state, raw_params)
    assert jnp.allclose(q, q_ref_bf16, atol=5e-3, rtol=5e-3), \
        "mismatch vs bf16-weight reference"

    # Loose semantic check vs. the full-f32 PyTorch-equivalent reference
    # (expected bf16 precision loss only).
    q_ref_f32 = reference_forward_f32(state, raw_params)
    assert jnp.allclose(q, q_ref_f32, atol=1e-1, rtol=1e-1), \
        "mismatch vs f32 reference"

    # Sanity-check the adaptive tiling with a larger batch (exercises the
    # multi-tile / dual-TC path on one compile of the same kernel body).
    big_state = jax.random.normal(jax.random.PRNGKey(1), (600, input_dims),
                                  jnp.float32)
    q_big = jax.block_until_ready(
        dueling_dqn_forward(big_state, kparams, n_actions))
    assert q_big.shape == (600, n_actions)
    assert jnp.allclose(q_big, reference_forward_bf16(big_state, raw_params),
                        atol=5e-3, rtol=5e-3), "mismatch on large batch"

    print("KERNEL_OK")
</pallas_src>

<mosaic_0001>
module attributes {stable_mosaic.version = 11 : i64} {
  func.func @kernel(%arg0: i32, %arg1: memref<16x8xbf16, #tpu.memory_space<vmem>>, %arg2: memref<8x512xbf16, #tpu.memory_space<vmem>>, %arg3: memref<1x512xf32, #tpu.memory_space<vmem>>, %arg4: memref<512x512xbf16, #tpu.memory_space<vmem>>, %arg5: memref<1x512xf32, #tpu.memory_space<vmem>>, %arg6: memref<512x128xbf16, #tpu.memory_space<vmem>>, %arg7: memref<1x128xf32, #tpu.memory_space<vmem>>, %arg8: memref<16x128xf32, #tpu.memory_space<vmem>>) attributes {dimension_semantics = [#tpu.dimension_semantics<parallel>], iteration_bounds = array<i64: 1>, scalar_prefetch = 0 : i64, scratch_operands = 0 : i64, tpu.core_type = #tpu.core_type<tc>, window_params = [{transform_indices = @transform_0, window_bounds = array<i64: 16, 8>}, {pipeline_mode = #tpu.pipeline_mode<synchronous>, transform_indices = @transform_1, window_bounds = array<i64: 8, 512>}, {pipeline_mode = #tpu.pipeline_mode<synchronous>, transform_indices = @transform_2, window_bounds = array<i64: 1, 512>}, {pipeline_mode = #tpu.pipeline_mode<synchronous>, transform_indices = @transform_3, window_bounds = array<i64: 512, 512>}, {pipeline_mode = #tpu.pipeline_mode<synchronous>, transform_indices = @transform_4, window_bounds = array<i64: 1, 512>}, {pipeline_mode = #tpu.pipeline_mode<synchronous>, transform_indices = @transform_5, window_bounds = array<i64: 512, 128>}, {pipeline_mode = #tpu.pipeline_mode<synchronous>, transform_indices = @transform_6, window_bounds = array<i64: 1, 128>}, {transform_indices = @transform_7, window_bounds = array<i64: 16, 128>}]} {
    %c0 = arith.constant 0 : index
    %c0_0 = arith.constant 0 : index
    %0 = vector.load %arg1[%c0, %c0_0] : memref<16x8xbf16, #tpu.memory_space<vmem>>, vector<16x8xbf16>
    %c0_1 = arith.constant 0 : index
    %c0_2 = arith.constant 0 : index
    %1 = vector.load %arg2[%c0_1, %c0_2] : memref<8x512xbf16, #tpu.memory_space<vmem>>, vector<8x512xbf16>
    %cst = arith.constant dense<0.000000e+00> : vector<16x512xf32>
    %2 = tpu.matmul %0, %1, %cst {dimension_numbers = #tpu.dot_dimension_numbers<[1], [0], [0], [1], [0, 0, 1, 1], [], []>} : vector<16x8xbf16>, vector<8x512xbf16>, vector<16x512xf32> -> vector<16x512xf32>
    %c0_3 = arith.constant 0 : index
    %c0_4 = arith.constant 0 : index
    %3 = vector.load %arg3[%c0_3, %c0_4] : memref<1x512xf32, #tpu.memory_space<vmem>>, vector<1x512xf32>
    %4 = vector.broadcast %3 : vector<1x512xf32> to vector<16x512xf32>
    %5 = arith.addf %2, %4 : vector<16x512xf32>
    %cst_5 = arith.constant 0.000000e+00 : f32
    %6 = vector.broadcast %cst_5 : f32 to vector<16x512xf32>
    %7 = arith.cmpf ogt, %5, %6 : vector<16x512xf32>
    %cst_6 = arith.constant 0.00999999977 : f32
    %8 = vector.broadcast %cst_6 : f32 to vector<16x512xf32>
    %9 = arith.mulf %8, %5 : vector<16x512xf32>
    %10 = arith.select %7, %5, %9 : vector<16x512xi1>, vector<16x512xf32>
    %11 = arith.truncf %10 : vector<16x512xf32> to vector<16x512xbf16>
    %c0_7 = arith.constant 0 : index
    %c0_8 = arith.constant 0 : index
    %12 = vector.load %arg4[%c0_7, %c0_8] : memref<512x512xbf16, #tpu.memory_space<vmem>>, vector<512x512xbf16>
    %cst_9 = arith.constant dense<0.000000e+00> : vector<16x512xf32>
    %13 = tpu.matmul %11, %12, %cst_9 {dimension_numbers = #tpu.dot_dimension_numbers<[1], [0], [0], [1], [0, 0, 1, 1], [], []>} : vector<16x512xbf16>, vector<512x512xbf16>, vector<16x512xf32> -> vector<16x512xf32>
    %c0_10 = arith.constant 0 : index
    %c0_11 = arith.constant 0 : index
    %14 = vector.load %arg5[%c0_10, %c0_11] : memref<1x512xf32, #tpu.memory_space<vmem>>, vector<1x512xf32>
    %15 = vector.broadcast %14 : vector<1x512xf32> to vector<16x512xf32>
    %16 = arith.addf %13, %15 : vector<16x512xf32>
    %cst_12 = arith.constant 0.000000e+00 : f32
    %17 = vector.broadcast %cst_12 : f32 to vector<16x512xf32>
    %18 = arith.cmpf ogt, %16, %17 : vector<16x512xf32>
    %cst_13 = arith.constant 0.00999999977 : f32
    %19 = vector.broadcast %cst_13 : f32 to vector<16x512xf32>
    %20 = arith.mulf %19, %16 : vector<16x512xf32>
    %21 = arith.select %18, %16, %20 : vector<16x512xi1>, vector<16x512xf32>
    %22 = arith.truncf %21 : vector<16x512xf32> to vector<16x512xbf16>
    %c0_14 = arith.constant 0 : index
    %c0_15 = arith.constant 0 : index
    %23 = vector.load %arg6[%c0_14, %c0_15] : memref<512x128xbf16, #tpu.memory_space<vmem>>, vector<512x128xbf16>
    %cst_16 = arith.constant dense<0.000000e+00> : vector<16x128xf32>
    %24 = tpu.matmul %22, %23, %cst_16 {dimension_numbers = #tpu.dot_dimension_numbers<[1], [0], [0], [1], [0, 0, 1, 1], [], []>} : vector<16x512xbf16>, vector<512x128xbf16>, vector<16x128xf32> -> vector<16x128xf32>
    %c0_17 = arith.constant 0 : index
    %c0_18 = arith.constant 0 : index
    %25 = vector.load %arg7[%c0_17, %c0_18] : memref<1x128xf32, #tpu.memory_space<vmem>>, vector<1x128xf32>
    %26 = vector.broadcast %25 : vector<1x128xf32> to vector<16x128xf32>
    %27 = arith.addf %24, %26 : vector<16x128xf32>
    %28 = vector.extract_strided_slice %27 {offsets = [0, 4], sizes = [16, 1], strides = [1, 1]} : vector<16x128xf32> to vector<16x1xf32>
    %29 = tpu.iota {dimensions = array<i32: 1>} : vector<16x128xi32>
    %c4_i32 = arith.constant 4 : i32
    %30 = vector.broadcast %c4_i32 : i32 to vector<16x128xi32>
    %31 = arith.cmpi slt, %29, %30 : vector<16x128xi32>
    %cst_19 = arith.constant 0.000000e+00 : f32
    %32 = vector.broadcast %cst_19 : f32 to vector<16x128xf32>
    %33 = arith.select %31, %27, %32 : vector<16x128xi1>, vector<16x128xf32>
    %cst_20 = arith.constant dense<0.000000e+00> : vector<16xf32>
    %34 = vector.multi_reduction <add>, %33, %cst_20 [1] : vector<16x128xf32> to vector<16xf32>
    %35 = vector.shape_cast %34 : vector<16xf32> to vector<16x1xf32>
    %cst_21 = arith.constant 2.500000e-01 : f32
    %36 = vector.broadcast %cst_21 : f32 to vector<16x1xf32>
    %37 = arith.mulf %35, %36 : vector<16x1xf32>
    %38 = vector.broadcast %37 : vector<16x1xf32> to vector<16x128xf32>
    %39 = arith.subf %27, %38 : vector<16x128xf32>
    %40 = vector.broadcast %28 : vector<16x1xf32> to vector<16x128xf32>
    %41 = arith.addf %39, %40 : vector<16x128xf32>
    %c0_22 = arith.constant 0 : index
    %c0_23 = arith.constant 0 : index
    %42 = vector.load %arg8[%c0_22, %c0_23] : memref<16x128xf32, #tpu.memory_space<vmem>>, vector<16x128xf32>
    tpu.vector_store %arg8[%c0_22, %c0_23], %41 {strides = array<i32>} : memref<16x128xf32, #tpu.memory_space<vmem>>, vector<16x128xf32>,
    return
  }
  func.func @transform_0(%arg0: i32) -> (i32, i32) {
    %c0_i32 = arith.constant 0 : i32
    %c0_i32_0 = arith.constant 0 : i32
    return %arg0, %c0_i32 : i32, i32
  }
  func.func @transform_1(%arg0: i32) -> (i32, i32) {
    %c0_i32 = arith.constant 0 : i32
    %c0_i32_0 = arith.constant 0 : i32
    %c0_i32_1 = arith.constant 0 : i32
    return %c0_i32, %c0_i32_0 : i32, i32
  }
  func.func @transform_2(%arg0: i32) -> (i32, i32) {
    %c0_i32 = arith.constant 0 : i32
    %c0_i32_0 = arith.constant 0 : i32
    %c0_i32_1 = arith.constant 0 : i32
    return %c0_i32, %c0_i32_0 : i32, i32
  }
  func.func @transform_3(%arg0: i32) -> (i32, i32) {
    %c0_i32 = arith.constant 0 : i32
    %c0_i32_0 = arith.constant 0 : i32
    %c0_i32_1 = arith.constant 0 : i32
    return %c0_i32, %c0_i32_0 : i32, i32
  }
  func.func @transform_4(%arg0: i32) -> (i32, i32) {
    %c0_i32 = arith.constant 0 : i32
    %c0_i32_0 = arith.constant 0 : i32
    %c0_i32_1 = arith.constant 0 : i32
    return %c0_i32, %c0_i32_0 : i32, i32
  }
  func.func @transform_5(%arg0: i32) -> (i32, i32) {
    %c0_i32 = arith.constant 0 : i32
    %c0_i32_0 = arith.constant 0 : i32
    %c0_i32_1 = arith.constant 0 : i32
    return %c0_i32, %c0_i32_0 : i32, i32
  }
  func.func @transform_6(%arg0: i32) -> (i32, i32) {
    %c0_i32 = arith.constant 0 : i32
    %c0_i32_0 = arith.constant 0 : i32
    %c0_i32_1 = arith.constant 0 : i32
    return %c0_i32, %c0_i32_0 : i32, i32
  }
  func.func @transform_7(%arg0: i32) -> (i32, i32) {
    %c0_i32 = arith.constant 0 : i32
    %c0_i32_0 = arith.constant 0 : i32
    return %arg0, %c0_i32 : i32, i32
  }
}

</mosaic_0001>

<bundles_post_ra>
// kernel: tpu_custom_call.1
= control target key start
LH: loop header
LB: loop body
LE: loop exit
PB: predicated region body
PF: predicated region fallthrough
CT: control target
= control target key end

     0   :  { %12 = vsyncpa [#allocation3], 0  ;;  %s2634_s0 = inlined_call_operand.vmem [shape: bf16[16,8], index: 0, kind: input, shape index: {}]   ;;  %s2635_s1 = inlined_call_operand.hbm [shape: bf16[8,512], index: 1, kind: input, shape index: {}]   ;;  %s2636_s2 = inlined_call_operand.vmem [shape: f32[1,512], index: 2, kind: input, shape index: {}]   ;;  %s2637_s3 = inlined_call_operand.hbm [shape: bf16[512,512], index: 3, kind: input, shape index: {}]   ;;  %s2638_s4 = inlined_call_operand.vmem [shape: f32[1,512], index: 4, kind: input, shape index: {}]   ;;  %s2639_s5 = inlined_call_operand.hbm [shape: bf16[512,128], index: 5, kind: input, shape index: {}]   ;;  %s2640_s6 = inlined_call_operand.vmem [shape: f32[1,128], index: 6, kind: input, shape index: {}]   ;;  %s2641_s7 = inlined_call_operand.hbm [shape: f32[16,128], index: 7, kind: output, shape index: {}]  }
   0x1   :  { %13 = vsyncpa [#allocation6], 0  ;;  %s34_s26 = sshll.u32 %s2637_s3, 4  ;;  %s35_s26 = int_to_ptr.hbm [resolvable:$true] %s34_s26 }
   0x2   :  { %14 = vsyncpa [#allocation4], 0  ;;  %s2521_s27 = smov [#allocation5]   ;;  %s22_s8 = sshll.u32 %s2635_s1, 4  ;;  %s23_s8 = int_to_ptr.hbm [resolvable:$true] %s22_s8 }
   0x3   :  { %s36_s28 = sshll.u32 %s2521_s27, 4  ;;  %s2522_s9 = smov 256   ;;  %s37_s28 = int_to_ptr.vmem [resolvable:$true] %s36_s28 }
   0x4   :  { %s2523_s10 = smov 16   ;;  %s2524_s11 = smov [#allocation2]  }
   0x5   :  { %42 = dma.hbm_to_vmem [thread:$0]  %s35_s26, 16384, %s37_s28, [#allocation6], %s2522_s9, %s2522_s9, %s2523_s10  }
   0x6   :  { %s24_s12 = sshll.u32 %s2524_s11, 4  ;;  %s49_s15 = sshll.u32 %s2639_s5, 4  ;;  %s25_s12 = int_to_ptr.vmem [resolvable:$true] %s24_s12  ;;  %s50_s15 = int_to_ptr.hbm [resolvable:$true] %s49_s15 }
   0x7   :  { %27 = dma.hbm_to_vmem [thread:$0]  %s23_s8, 256, %s25_s12, [#allocation3]  }
   0x8   :  { %s2525_s3 = smov [#allocation7]   ;;  %s2526_s17 = smov 64  }
   0x9   :  { %s51_s16 = sshll.u32 %s2525_s3, 4  ;;  %s2527_s18 = smov 4   ;;  %s52_s16 = int_to_ptr.vmem [resolvable:$true] %s51_s16 }
   0xa   :  { %57 = dma.hbm_to_vmem [thread:$0]  %s50_s15, 4096, %s52_s16, [#allocation6], %s2526_s17, %s2526_s17, %s2527_s18  }
   0xb   :  { %2515 = dma.done.wait [#allocation3], 256  }
   0xc   :  { %2516 = vsyncadd [#allocation3], 4294967040 }
   0xd   :  { %2517 = dma.done.wait [#allocation6], 20480  }
   0xe   :  { %2518 = vsyncadd [#allocation6], 4294946816  ;;  %v75_v0 = vld [vmem:[#allocation2] sm:$0xff]  ;;  %v76_v1 = vld [vmem:[#allocation2 + $0x8] sm:$0xff]  ;;  %vm106_vm0 = vcmask 1043456   ;;  %vm102_vm1 = vcmask 64512  }
   0xf   :  { %v94_v2 = vunpack.c.l.b16 %v75_v0  ;;  %v95_v3 = vunpack.c.h.b16 %v75_v0  ;;  %v96_v4 = vunpack.c.l.b16 %v76_v1  ;;  %v97_v5 = vunpack.c.h.b16 %v76_v1  ;;  %v1718_v6 = vld [vmem:[#allocation5 + $0xe0] sm:$0xf]  ;;  %v2275_v7 = vld [vmem:[#allocation5 + $0xec] sm:$0xf0]  ;;  %s1582_s25 = sshll.u32 %s2641_s7, 4  ;;  %s2530_s26 = smov 128   ;;  %s1583_s25 = int_to_ptr.hbm [resolvable:$true] %s1582_s25 }
  0x10   :  { %v1846_v8 = vld [vmem:[#allocation5 + $0x1e0] sm:$0xf]  ;;  %v2307_v9 = vld [vmem:[#allocation5 + $0x1ec] sm:$0xf0]  ;;  %v1719_v19 = vor.u32 %v2275_v7, %v1718_v6  ;;  %s2531_s27 = smov 8  }
  0x11   :  { %v98_v10 = vpack.c.b16 %v94_v2, %v94_v2  ;;  %v99_v11 = vpack.c.b16 %v95_v3, %v95_v3  ;;  %v100_v12 = vpack.c.b16 %v96_v4, %v96_v4  ;;  %v101_v13 = vpack.c.b16 %v97_v5, %v97_v5  ;;  %v2244_v14 = vld [vmem:[%s2634_s0] sm:$0xff]  ;;  %v1702_v15 = vld [vmem:[#allocation5 + $0xc0] sm:$0xf] }
  0x12   :  { %v2271_v16 = vld [vmem:[#allocation5 + $0xcc] sm:$0xf0]  ;;  %v1830_v17 = vld [vmem:[#allocation5 + $0x1c0] sm:$0xf]  ;;  %v1847_v20 = vor.u32 %v2307_v9, %v1846_v8 }
  0x13   :  { %v1974_v18 = vld [vmem:[#allocation5 + $0x2e0] sm:$0xf]  ;;  %v2339_v21 = vld [vmem:[#allocation5 + $0x2ec] sm:$0xf0]  ;;  %v108_v24 = vsel %vm106_vm0, %v98_v10, 0  ;;  %v111_v25 = vsel %vm106_vm0, %v99_v11, 0  ;;  %v1703_v33 = vor.u32 %v2271_v16, %v1702_v15 }
  0x14   :  { %v2102_v22 = vld [vmem:[#allocation5 + $0x3e0] sm:$0xf]  ;;  %v2371_v23 = vld [vmem:[#allocation5 + $0x3ec] sm:$0xf0]  ;;  %v114_v26 = vsel %vm106_vm0, %v100_v12, 0  ;;  %v117_v27 = vsel %vm106_vm0, %v101_v13, 0  ;;  %126 = vmatpush.bf16.msra.mxu0 %v108_v24  ;;  %140 = vmatpush.bf16.msra.mxu1 %v111_v25  ;;  %v1975_v29 = vor.u32 %v2339_v21, %v1974_v18 }
  0x15   :  { %v2303_v28 = vld [vmem:[#allocation5 + $0x1cc] sm:$0xf0]  ;;  %154 = vmatpush.bf16.msra.mxu2 %v114_v26  ;;  %168 = vmatpush.bf16.msra.mxu3 %v117_v27  ;;  %v2103_v30 = vor.u32 %v2371_v23, %v2102_v22  ;;  %v1686_v31 = vld [vmem:[#allocation5 + $0xa0] sm:$0xf] }
  0x16   :  { %v1958_v32 = vld [vmem:[#allocation5 + $0x2c0] sm:$0xf]  ;;  %v1831_v34 = vor.u32 %v2303_v28, %v1830_v17  ;;  %v2335_v35 = vld [vmem:[#allocation5 + $0x2cc] sm:$0xf0] }
  0x17   :  { %v2086_v36 = vld [vmem:[#allocation5 + $0x3c0] sm:$0xf]  ;;  %v2367_v37 = vld [vmem:[#allocation5 + $0x3cc] sm:$0xf0]  ;;  %1600 = vmatmul.msk.bf16.vlgmr.msra.gmra.mxu0 %vm102_vm1, %v2244_v14  ;;  %1601 = vmatmul.msk.bf16.vlgmr.msra.gmra.mxu1 %vm102_vm1, %v2244_v14  ;;  %v1959_v41 = vor.u32 %v2335_v35, %v1958_v32 }
  0x18   :  { %981 = vmatpush.bf16.msrb.mxu0 %v1719_v19  ;;  %995 = vmatpush.bf16.msrb.mxu1 %v1847_v20  ;;  %v2267_v38 = vld [vmem:[#allocation5 + $0xac] sm:$0xf0]  ;;  %v1814_v39 = vld [vmem:[#allocation5 + $0x1a0] sm:$0xf]  ;;  %v2087_v42 = vor.u32 %v2367_v37, %v2086_v36  ;;  %v2273_v37 = vld [vmem:[#allocation5 + $0xe4] sm:$0xf] }
  0x19   :  { %v2299_v40 = vld [vmem:[#allocation5 + $0x1ac] sm:$0xf0]  ;;  %1602 = vmatmul.msk.bf16.vlgmr.msra.gmra.mxu2 %vm102_vm1, %v2244_v14  ;;  %1603 = vmatmul.msk.bf16.vlgmr.msra.gmra.mxu3 %vm102_vm1, %v2244_v14  ;;  %v1670_v43 = vld [vmem:[#allocation5 + $0x80] sm:$0xf]  ;;  %v1687_v45 = vor.u32 %v2267_v38, %v1686_v31  ;;  %v1720_v38 = vld [vmem:[#allocation5 + $0xf0] sm:$0xf0] }
  0x1a   :  { %1009 = vmatpush.bf16.msrb.mxu2 %v1975_v29  ;;  %1023 = vmatpush.bf16.msrb.mxu3 %v2103_v30  ;;  %v1942_v44 = vld [vmem:[#allocation5 + $0x2a0] sm:$0xf]  ;;  %v1815_v46 = vor.u32 %v2299_v40, %v1814_v39  ;;  %v2331_v47 = vld [vmem:[#allocation5 + $0x2ac] sm:$0xf0]  ;;  %v2305_v39 = vld [vmem:[#allocation5 + $0x1e4] sm:$0xf] }
  0x1b   :  { %v2070_v48 = vld [vmem:[#allocation5 + $0x3a0] sm:$0xf]  ;;  %v2363_v49 = vld [vmem:[#allocation5 + $0x3ac] sm:$0xf0]  ;;  %v1943_v53 = vor.u32 %v2331_v47, %v1942_v44  ;;  %v1848_v40 = vld [vmem:[#allocation5 + $0x1f0] sm:$0xf0] }
  0x1c   :  { %982 = vmatpush.bf16.msrb.mxu0 %v1703_v33  ;;  %996 = vmatpush.bf16.msrb.mxu1 %v1831_v34  ;;  %v2263_v50 = vld [vmem:[#allocation5 + $0x8c] sm:$0xf0]  ;;  %v1798_v51 = vld [vmem:[#allocation5 + $0x180] sm:$0xf]  ;;  %v2071_v54 = vor.u32 %v2363_v49, %v2070_v48  ;;  %v2269_v47 = vld [vmem:[#allocation5 + $0xc4] sm:$0xf] }
  0x1d   :  { %v2295_v52 = vld [vmem:[#allocation5 + $0x18c] sm:$0xf0]  ;;  %v1654_v55 = vld [vmem:[#allocation5 + $0x60] sm:$0xf]  ;;  %v1671_v57 = vor.u32 %v2263_v50, %v1670_v43  ;;  %v2337_v50 = vld [vmem:[#allocation5 + $0x2e4] sm:$0xf] }
  0x1e   :  { %1010 = vmatpush.bf16.msrb.mxu2 %v1959_v41  ;;  %1024 = vmatpush.bf16.msrb.mxu3 %v2087_v42  ;;  %v1926_v56 = vld [vmem:[#allocation5 + $0x280] sm:$0xf]  ;;  %v1799_v58 = vor.u32 %v2295_v52, %v1798_v51  ;;  %v2327_v59 = vld [vmem:[#allocation5 + $0x28c] sm:$0xf0]  ;;  %v1723_v51 = vor.u32 %v2273_v37, %v1720_v38  ;;  %v1851_v52 = vor.u32 %v2305_v39, %v1848_v40  ;;  %v2253_v37 = vld [vmem:[#allocation5 + $0x44] sm:$0xf] }
  0x1f   :  { %v2054_v60 = vld [vmem:[#allocation5 + $0x380] sm:$0xf]  ;;  %v2359_v61 = vld [vmem:[#allocation5 + $0x38c] sm:$0xf0]  ;;  %v1927_v1 = vor.u32 %v2327_v59, %v1926_v56  ;;  %v1704_v56 = vld [vmem:[#allocation5 + $0xd0] sm:$0xf0] }
  0x20   :  { %983 = vmatpush.bf16.msrb.mxu0 %v1687_v45  ;;  %997 = vmatpush.bf16.msrb.mxu1 %v1815_v46  ;;  %v2259_v62 = vld [vmem:[#allocation5 + $0x6c] sm:$0xf0]  ;;  %v1782_v63 = vld [vmem:[#allocation5 + $0x160] sm:$0xf]  ;;  %v2055_v2 = vor.u32 %v2359_v61, %v2054_v60  ;;  %v1640_v38 = vld [vmem:[#allocation5 + $0x50] sm:$0xf0] }
  0x21   :  { %v2291_v0 = vld [vmem:[#allocation5 + $0x16c] sm:$0xf0]  ;;  %v1638_v3 = vld [vmem:[#allocation5 + $0x40] sm:$0xf]  ;;  %v1655_v5 = vor.u32 %v2259_v62, %v1654_v55  ;;  %v2104_v55 = vld [vmem:[#allocation5 + $0x3f0] sm:$0xf0]  ;;  %v1643_v39 = vor.u32 %v2253_v37, %v1640_v38 }
  0x22   :  { %1011 = vmatpush.bf16.msrb.mxu2 %v1943_v53  ;;  %1025 = vmatpush.bf16.msrb.mxu3 %v2071_v54  ;;  %v1910_v4 = vld [vmem:[#allocation5 + $0x260] sm:$0xf]  ;;  %v1783_v6 = vor.u32 %v2291_v0, %v1782_v63  ;;  %v2323_v7 = vld [vmem:[#allocation5 + $0x26c] sm:$0xf0]  ;;  %v1976_v53 = vld [vmem:[#allocation5 + $0x2f0] sm:$0xf0] }
  0x23   :  { %v2038_v8 = vld [vmem:[#allocation5 + $0x360] sm:$0xf]  ;;  %v2355_v9 = vld [vmem:[#allocation5 + $0x36c] sm:$0xf0]  ;;  %v1911_v13 = vor.u32 %v2323_v7, %v1910_v4  ;;  %v2369_v54 = vld [vmem:[#allocation5 + $0x3e4] sm:$0xf]  ;;  %v1979_v61 = vor.u32 %v2337_v50, %v1976_v53 }
  0x24   :  { %984 = vmatpush.bf16.msrb.mxu0 %v1671_v57  ;;  %998 = vmatpush.bf16.msrb.mxu1 %v1799_v58  ;;  %v2255_v10 = vld [vmem:[#allocation5 + $0x4c] sm:$0xf0]  ;;  %v1766_v11 = vld [vmem:[#allocation5 + $0x140] sm:$0xf]  ;;  %v2039_v14 = vor.u32 %v2355_v9, %v2038_v8  ;;  %v2301_v57 = vld [vmem:[#allocation5 + $0x1c4] sm:$0xf]  ;;  %v2107_v62 = vor.u32 %v2369_v54, %v2104_v55 }
  0x25   :  { %v2287_v12 = vld [vmem:[#allocation5 + $0x14c] sm:$0xf0]  ;;  %v1622_v15 = vld [vmem:[#allocation5 + $0x20] sm:$0xf]  ;;  %v1639_v17 = vor.u32 %v2255_v10, %v1638_v3  ;;  %v1832_v58 = vld [vmem:[#allocation5 + $0x1d0] sm:$0xf0] }
  0x26   :  { %1012 = vmatpush.bf16.msrb.mxu2 %v1927_v1  ;;  %1026 = vmatpush.bf16.msrb.mxu3 %v2055_v2  ;;  %v1894_v16 = vld [vmem:[#allocation5 + $0x240] sm:$0xf]  ;;  %v1767_v18 = vor.u32 %v2287_v12, %v1766_v11  ;;  %v2319_v19 = vld [vmem:[#allocation5 + $0x24c] sm:$0xf0]  ;;  %v2265_v63 = vld [vmem:[#allocation5 + $0xa4] sm:$0xf]  ;;  %v1707_v1 = vor.u32 %v2269_v47, %v1704_v56  ;;  %v1835_v2 = vor.u32 %v2301_v57, %v1832_v58 }
  0x27   :  { %v2022_v20 = vld [vmem:[#allocation5 + $0x340] sm:$0xf]  ;;  %v2351_v21 = vld [vmem:[#allocation5 + $0x34c] sm:$0xf0]  ;;  %v1895_v25 = vor.u32 %v2319_v19, %v1894_v16  ;;  %v2333_v0 = vld [vmem:[#allocation5 + $0x2c4] sm:$0xf] }
  0x28   :  { %985 = vmatpush.bf16.msrb.mxu0 %v1655_v5  ;;  %999 = vmatpush.bf16.msrb.mxu1 %v1783_v6  ;;  %v2251_v22 = vld [vmem:[#allocation5 + $0x2c] sm:$0xf0]  ;;  %v1750_v23 = vld [vmem:[#allocation5 + $0x120] sm:$0xf]  ;;  %v2023_v26 = vor.u32 %v2351_v21, %v2022_v20  ;;  %v1960_v3 = vld [vmem:[#allocation5 + $0x2d0] sm:$0xf0] }
  0x29   :  { %v2283_v24 = vld [vmem:[#allocation5 + $0x12c] sm:$0xf0]  ;;  %v1606_v27 = vld [vmem:[#allocation5] sm:$0xf]  ;;  %v1623_v30 = vor.u32 %v2251_v22, %v1622_v15  ;;  %v2365_v4 = vld [vmem:[#allocation5 + $0x3c4] sm:$0xf]  ;;  %v1963_v9 = vor.u32 %v2333_v0, %v1960_v3 }
  0x2a   :  { %1013 = vmatpush.bf16.msrb.mxu2 %v1911_v13  ;;  %1027 = vmatpush.bf16.msrb.mxu3 %v2039_v14  ;;  %v2247_v28 = vld [vmem:[#allocation5 + $0xc] sm:$0xf0]  ;;  %v1878_v29 = vld [vmem:[#allocation5 + $0x220] sm:$0xf]  ;;  %v1751_v31 = vor.u32 %v2283_v24, %v1750_v23  ;;  %v2088_v5 = vld [vmem:[#allocation5 + $0x3d0] sm:$0xf0] }
  0x2b   :  { %v2315_v32 = vld [vmem:[#allocation5 + $0x22c] sm:$0xf0]  ;;  %v2006_v33 = vld [vmem:[#allocation5 + $0x320] sm:$0xf]  ;;  %v1607_v45 = vor.u32 %v2247_v28, %v1606_v27  ;;  %v1688_v6 = vld [vmem:[#allocation5 + $0xb0] sm:$0xf0]  ;;  %v2091_v10 = vor.u32 %v2365_v4, %v2088_v5 }
  0x2c   :  { %986 = vmatpush.bf16.msrb.mxu0 %v1639_v17  ;;  %1000 = vmatpush.bf16.msrb.mxu1 %v1767_v18  ;;  %v2347_v34 = vld [vmem:[#allocation5 + $0x32c] sm:$0xf0]  ;;  %v1734_v35 = vld [vmem:[#allocation5 + $0x100] sm:$0xf]  ;;  %v1879_v41 = vor.u32 %v2315_v32, %v1878_v29  ;;  %v2297_v7 = vld [vmem:[#allocation5 + $0x1a4] sm:$0xf]  ;;  %v1691_v11 = vor.u32 %v2265_v63, %v1688_v6 }
  0x2d   :  { %v2279_v36 = vld [vmem:[#allocation5 + $0x10c] sm:$0xf0]  ;;  %v2007_v42 = vor.u32 %v2347_v34, %v2006_v33  ;;  %v1862_v43 = vld [vmem:[#allocation5 + $0x200] sm:$0xf]  ;;  %v1816_v8 = vld [vmem:[#allocation5 + $0x1b0] sm:$0xf0] }
  0x2e   :  { %1014 = vmatpush.bf16.msrb.mxu2 %v1895_v25  ;;  %1028 = vmatpush.bf16.msrb.mxu3 %v2023_v26  ;;  %v2311_v44 = vld [vmem:[#allocation5 + $0x20c] sm:$0xf0]  ;;  %v1735_v46 = vor.u32 %v2279_v36, %v1734_v35  ;;  %v1990_v48 = vld [vmem:[#allocation5 + $0x300] sm:$0xf]  ;;  %v1819_v12 = vor.u32 %v2297_v7, %v1816_v8  ;;  %v2261_v13 = vld [vmem:[#allocation5 + $0x84] sm:$0xf] }
  0x2f   :  { %v2343_v49 = vld [vmem:[#allocation5 + $0x30c] sm:$0xf0]  ;;  %v1863_v59 = vor.u32 %v2311_v44, %v1862_v43  ;;  %v1672_v14 = vld [vmem:[#allocation5 + $0x90] sm:$0xf0]  ;;  %v2293_v15 = vld [vmem:[#allocation5 + $0x184] sm:$0xf] }
  0x30   :  { %987 = vmatpush.bf16.msrb.mxu0 %v1623_v30  ;;  %1001 = vmatpush.bf16.msrb.mxu1 %v1751_v31  ;;  %v1991_v60 = vor.u32 %v2343_v49, %v1990_v48  ;;  %v1800_v16 = vld [vmem:[#allocation5 + $0x190] sm:$0xf0]  ;;  %v1675_v17 = vor.u32 %v2261_v13, %v1672_v14  ;;  %v2329_v19 = vld [vmem:[#allocation5 + $0x2a4] sm:$0xf] }
  0x31   :  { %v1803_v18 = vor.u32 %v2293_v15, %v1800_v16  ;;  %v1944_v20 = vld [vmem:[#allocation5 + $0x2b0] sm:$0xf0]  ;;  %v2361_v21 = vld [vmem:[#allocation5 + $0x3a4] sm:$0xf]  ;;  %v77_v15 = vld [vmem:[%s2636_s2] sm:$0xf] }
  0x32   :  { %1015 = vmatpush.bf16.msrb.mxu2 %v1879_v41  ;;  %1029 = vmatpush.bf16.msrb.mxu3 %v2007_v42  ;;  %v1947_v22 = vor.u32 %v2329_v19, %v1944_v20  ;;  %v2072_v23 = vld [vmem:[#allocation5 + $0x3b0] sm:$0xf0]  ;;  %v2257_v25 = vld [vmem:[#allocation5 + $0x64] sm:$0xf]  ;;  %v80_v16 = vperm.slane %v77_v15, 1  ;;  %v79_v19 = vperm.slane %v77_v15, 0 }
  0x33   :  { %v2075_v24 = vor.u32 %v2361_v21, %v2072_v23  ;;  %v1656_v26 = vld [vmem:[#allocation5 + $0x70] sm:$0xf0]  ;;  %v2289_v27 = vld [vmem:[#allocation5 + $0x164] sm:$0xf] }
  0x34   :  { %988 = vmatpush.bf16.msrb.mxu0 %v1607_v45  ;;  %1002 = vmatpush.bf16.msrb.mxu1 %v1735_v46  ;;  %v1659_v28 = vor.u32 %v2257_v25, %v1656_v26  ;;  %v1784_v29 = vld [vmem:[#allocation5 + $0x170] sm:$0xf0]  ;;  %v2325_v31 = vld [vmem:[#allocation5 + $0x284] sm:$0xf]  ;;  %v81_v25 = vperm.slane %v77_v15, 2  ;;  %v82_v26 = vperm.slane %v77_v15, 3 }
  0x35   :  { %v1787_v30 = vor.u32 %v2289_v27, %v1784_v29  ;;  %v1928_v32 = vld [vmem:[#allocation5 + $0x290] sm:$0xf0]  ;;  %v2357_v33 = vld [vmem:[#allocation5 + $0x384] sm:$0xf] }
  0x36   :  { %1016 = vmatpush.bf16.msrb.mxu2 %v1863_v59  ;;  %1030 = vmatpush.bf16.msrb.mxu3 %v1991_v60  ;;  %v1931_v34 = vor.u32 %v2325_v31, %v1928_v32  ;;  %v2056_v35 = vld [vmem:[#allocation5 + $0x390] sm:$0xf0]  ;;  %v2285_v40 = vld [vmem:[#allocation5 + $0x144] sm:$0xf]  ;;  %v1726_v32 = vld [vmem:[#allocation5 + $0xe8] sm:$0xf] }
  0x37   :  { %v2059_v36 = vor.u32 %v2357_v33, %v2056_v35  ;;  %v1768_v41 = vld [vmem:[#allocation5 + $0x150] sm:$0xf0]  ;;  %v2321_v43 = vld [vmem:[#allocation5 + $0x264] sm:$0xf]  ;;  %v2276_v33 = vld [vmem:[#allocation5 + $0xf4] sm:$0xf0] }
  0x38   :  { %1037 = vmatpush.bf16.msra.mxu0 %v1723_v51  ;;  %1051 = vmatpush.bf16.msra.mxu1 %v1851_v52  ;;  %v1771_v42 = vor.u32 %v2285_v40, %v1768_v41  ;;  %v1912_v44 = vld [vmem:[#allocation5 + $0x270] sm:$0xf0]  ;;  %v2353_v45 = vld [vmem:[#allocation5 + $0x364] sm:$0xf]  ;;  %v1854_v35 = vld [vmem:[#allocation5 + $0x1e8] sm:$0xf]  ;;  %v1727_v41 = vor.u32 %v2276_v33, %v1726_v32 }
  0x39   :  { %v1915_v46 = vor.u32 %v2321_v43, %v1912_v44  ;;  %v2040_v47 = vld [vmem:[#allocation5 + $0x370] sm:$0xf0]  ;;  %v2249_v49 = vld [vmem:[#allocation5 + $0x24] sm:$0xf]  ;;  %v1662_v32 = vld [vmem:[#allocation5 + $0x68] sm:$0xf] }
  0x3a   :  { %1065 = vmatpush.bf16.msra.mxu2 %v1979_v61  ;;  %1079 = vmatpush.bf16.msra.mxu3 %v2107_v62  ;;  %v2043_v48 = vor.u32 %v2353_v45, %v2040_v47  ;;  %v1624_v50 = vld [vmem:[#allocation5 + $0x30] sm:$0xf0]  ;;  %v2281_v51 = vld [vmem:[#allocation5 + $0x124] sm:$0xf]  ;;  %v2272_v47 = vld [vmem:[#allocation5 + $0xd4] sm:$0xf0] }
  0x3b   :  { %v1627_v52 = vor.u32 %v2249_v49, %v1624_v50  ;;  %v1752_v53 = vld [vmem:[#allocation5 + $0x130] sm:$0xf0]  ;;  %v2317_v55 = vld [vmem:[#allocation5 + $0x244] sm:$0xf]  ;;  %v2260_v33 = vld [vmem:[#allocation5 + $0x74] sm:$0xf0] }
  0x3c   :  { %1038 = vmatpush.bf16.msra.mxu0 %v1707_v1  ;;  %1052 = vmatpush.bf16.msra.mxu1 %v1835_v2  ;;  %v1755_v54 = vor.u32 %v2281_v51, %v1752_v53  ;;  %v1896_v56 = vld [vmem:[#allocation5 + $0x250] sm:$0xf0]  ;;  %v2349_v57 = vld [vmem:[#allocation5 + $0x344] sm:$0xf]  ;;  %v2304_v51 = vld [vmem:[#allocation5 + $0x1d4] sm:$0xf0] }
  0x3d   :  { %v1899_v58 = vor.u32 %v2317_v55, %v1896_v56  ;;  %v2024_v59 = vld [vmem:[#allocation5 + $0x350] sm:$0xf0]  ;;  %v2245_v61 = vld [vmem:[#allocation5 + $0x4] sm:$0xf]  ;;  %v2340_v53 = vld [vmem:[#allocation5 + $0x2f4] sm:$0xf0] }
  0x3e   :  { %1066 = vmatpush.bf16.msra.mxu2 %v1963_v9  ;;  %1080 = vmatpush.bf16.msra.mxu3 %v2091_v10  ;;  %v2027_v60 = vor.u32 %v2349_v57, %v2024_v59  ;;  %v1608_v62 = vld [vmem:[#allocation5 + $0x10] sm:$0xf0]  ;;  %v2277_v63 = vld [vmem:[#allocation5 + $0x104] sm:$0xf]  ;;  %v2110_v56 = vld [vmem:[#allocation5 + $0x3e8] sm:$0xf] }
  0x3f   :  { %v1611_v0 = vor.u32 %v2245_v61, %v1608_v62  ;;  %v1736_v1 = vld [vmem:[#allocation5 + $0x110] sm:$0xf0]  ;;  %v2313_v3 = vld [vmem:[#allocation5 + $0x224] sm:$0xf]  ;;  %v2372_v57 = vld [vmem:[#allocation5 + $0x3f4] sm:$0xf0] }
  0x40   :  { %1039 = vmatpush.bf16.msra.mxu0 %v1691_v11  ;;  %1053 = vmatpush.bf16.msra.mxu1 %v1819_v12  ;;  %v1739_v2 = vor.u32 %v2277_v63, %v1736_v1  ;;  %v1880_v4 = vld [vmem:[#allocation5 + $0x230] sm:$0xf0]  ;;  %v2345_v5 = vld [vmem:[#allocation5 + $0x324] sm:$0xf]  ;;  %v2268_v63 = vld [vmem:[#allocation5 + $0xb4] sm:$0xf0] }
  0x41   :  { %v2008_v6 = vld [vmem:[#allocation5 + $0x330] sm:$0xf0]  ;;  %v1883_v7 = vor.u32 %v2313_v3, %v1880_v4  ;;  %v2309_v9 = vld [vmem:[#allocation5 + $0x204] sm:$0xf]  ;;  %v2300_v3 = vld [vmem:[#allocation5 + $0x1b4] sm:$0xf0] }
  0x42   :  { %1067 = vmatpush.bf16.msra.mxu2 %v1947_v22  ;;  %1081 = vmatpush.bf16.msra.mxu3 %v2075_v24  ;;  %v2011_v8 = vor.u32 %v2345_v5, %v2008_v6  ;;  %v1864_v10 = vld [vmem:[#allocation5 + $0x210] sm:$0xf0]  ;;  %v2341_v12 = vld [vmem:[#allocation5 + $0x304] sm:$0xf] }
  0x43   :  { %v1867_v11 = vor.u32 %v2309_v9, %v1864_v10  ;;  %v1992_v13 = vld [vmem:[#allocation5 + $0x310] sm:$0xf0] }
  0x44   :  { %1040 = vmatpush.bf16.msra.mxu0 %v1675_v17  ;;  %1054 = vmatpush.bf16.msra.mxu1 %v1803_v18  ;;  %v1995_v14 = vor.u32 %v2341_v12, %v1992_v13  ;;  %v1966_v13 = vld [vmem:[#allocation5 + $0x2c8] sm:$0xf] }
  0x46   :  { %1068 = vmatpush.bf16.msra.mxu2 %v1931_v34  ;;  %1082 = vmatpush.bf16.msra.mxu3 %v2059_v36  ;;  %v2308_v36 = vld [vmem:[#allocation5 + $0x1f4] sm:$0xf0] }
  0x47   :  { %v1855_v45 = vor.u32 %v2308_v36, %v1854_v35  ;;  %v2292_v35 = vld [vmem:[#allocation5 + $0x174] sm:$0xf0] }
  0x48   :  { %1041 = vmatpush.bf16.msra.mxu0 %v1659_v28  ;;  %1055 = vmatpush.bf16.msra.mxu1 %v1787_v30 }
  0x4a   :  { %1069 = vmatpush.bf16.msra.mxu2 %v1915_v46  ;;  %1083 = vmatpush.bf16.msra.mxu3 %v2043_v48  ;;  %v1710_v46 = vld [vmem:[#allocation5 + $0xc8] sm:$0xf] }
  0x4b   :  { %v1838_v48 = vld [vmem:[#allocation5 + $0x1c8] sm:$0xf] }
  0x4c   :  { %1042 = vmatpush.bf16.msra.mxu0 %v1643_v39  ;;  %1056 = vmatpush.bf16.msra.mxu1 %v1771_v42  ;;  %v1839_v1 = vor.u32 %v2304_v51, %v1838_v48 }
  0x4e   :  { %1070 = vmatpush.bf16.msra.mxu2 %v1899_v58  ;;  %1084 = vmatpush.bf16.msra.mxu3 %v2027_v60  ;;  %v1694_v58 = vld [vmem:[#allocation5 + $0xa8] sm:$0xf] }
  0x50   :  { %1043 = vmatpush.bf16.msra.mxu0 %v1627_v52  ;;  %1057 = vmatpush.bf16.msra.mxu1 %v1755_v54  ;;  %v1982_v52 = vld [vmem:[#allocation5 + $0x2e8] sm:$0xf] }
  0x51   :  { %v1983_v6 = vor.u32 %v2340_v53, %v1982_v52  ;;  %v1918_v52 = vld [vmem:[#allocation5 + $0x268] sm:$0xf]  ;;  %v2324_v53 = vld [vmem:[#allocation5 + $0x274] sm:$0xf0] }
  0x52   :  { %1071 = vmatpush.bf16.msra.mxu2 %v1883_v7  ;;  %1085 = vmatpush.bf16.msra.mxu3 %v2011_v8  ;;  %v2111_v7 = vor.u32 %v2372_v57, %v2110_v56  ;;  %v1695_v8 = vor.u32 %v2268_v63, %v1694_v58  ;;  %v1630_v58 = vld [vmem:[#allocation5 + $0x28] sm:$0xf] }
  0x54   :  { %1044 = vmatpush.bf16.msra.mxu0 %v1611_v0  ;;  %1058 = vmatpush.bf16.msra.mxu1 %v1739_v2  ;;  %v1711_v0 = vor.u32 %v2272_v47, %v1710_v46  ;;  %v1822_v2 = vld [vmem:[#allocation5 + $0x1a8] sm:$0xf]  ;;  %v2288_v47 = vld [vmem:[#allocation5 + $0x154] sm:$0xf0] }
  0x55   :  { %v1774_v46 = vld [vmem:[#allocation5 + $0x148] sm:$0xf] }
  0x56   :  { %1072 = vmatpush.bf16.msra.mxu2 %v1867_v11  ;;  %1086 = vmatpush.bf16.msra.mxu3 %v1995_v14  ;;  %v2336_v14 = vld [vmem:[#allocation5 + $0x2d4] sm:$0xf0]  ;;  %v1775_v57 = vor.u32 %v2288_v47, %v1774_v46  ;;  %v2298_v46 = vld [vmem:[#allocation5 + $0x1ac] sm:$0xf]  ;;  %v1824_v47 = vld [vmem:[#allocation5 + $0x1b8] sm:$0xf0] }
  0x94   :  { %v128_v17 = vpop.f32.mrf.mxu0  ;;  %v142_v18 = vpop.f32.mrf.mxu1 }
  0x95   :  { %v143_v20 = vadd.f32 %v142_v18, %v80_v16  ;;  %v129_v21 = vadd.f32 %v128_v17, %v79_v19  ;;  %v1823_v17 = vor.u32 %v2300_v3, %v1822_v2  ;;  %v2094_v18 = vld [vmem:[#allocation5 + $0x3c8] sm:$0xf]  ;;  %v2352_v3 = vld [vmem:[#allocation5 + $0x354] sm:$0xf0] }
  0x96   :  { %v2030_v2 = vld [vmem:[#allocation5 + $0x348] sm:$0xf] }
  0x97   :  { %v184_v22 = vmul.f32 0.01, %v143_v20  ;;  %vm176_vm2 = vcmp.gt.f32.partialorder %v143_v20, 0.0  ;;  %v183_v29 = vmul.f32 0.01, %v129_v21  ;;  %vm175_vm3 = vcmp.gt.f32.partialorder %v129_v21, 0.0 }
  0x99   :  { %v192_v34 = vsel %vm176_vm2, %v143_v20, %v184_v22  ;;  %v191_v42 = vsel %vm175_vm3, %v129_v21, %v183_v29  ;;  %v1678_v20 = vld [vmem:[#allocation5 + $0x88] sm:$0xf]  ;;  %v2264_v21 = vld [vmem:[#allocation5 + $0x94] sm:$0xf0] }
  0x9a   :  { %v1806_v22 = vld [vmem:[#allocation5 + $0x188] sm:$0xf]  ;;  %v2332_v29 = vld [vmem:[#allocation5 + $0x2b4] sm:$0xf0] }
  0x9c   :  { %v156_v23 = vpop.f32.mrf.mxu2  ;;  %v170_v24 = vpop.f32.mrf.mxu3 }
  0x9d   :  { %v130_v27 = vpop.f32.mrf.mxu0  ;;  %v144_v28 = vpop.f32.mrf.mxu1  ;;  %v157_v39 = vadd.f32 %v156_v23, %v81_v25  ;;  %v171_v40 = vadd.f32 %v170_v24, %v82_v26  ;;  %v2296_v23 = vld [vmem:[#allocation5 + $0x194] sm:$0xf0]  ;;  %v1967_v24 = vor.u32 %v2336_v14, %v1966_v13  ;;  %v2031_v13 = vor.u32 %v2352_v3, %v2030_v2  ;;  %v2306_v14 = vld [vmem:[#allocation5 + $0x1ec] sm:$0xf]  ;;  %v2080_v3 = vld [vmem:[#allocation5 + $0x3b8] sm:$0xf0] }
  0x9e   :  { %v131_v30 = vadd.f32 %v130_v27, %v79_v19  ;;  %v145_v31 = vadd.f32 %v144_v28, %v80_v16  ;;  %v2368_v19 = vld [vmem:[#allocation5 + $0x3d4] sm:$0xf0]  ;;  %v1679_v27 = vor.u32 %v2264_v21, %v1678_v20  ;;  %v1807_v28 = vor.u32 %v2296_v23, %v1806_v22  ;;  %v2014_v20 = vld [vmem:[#allocation5 + $0x328] sm:$0xf]  ;;  %v2362_v2 = vld [vmem:[#allocation5 + $0x3ac] sm:$0xf] }
  0x9f   :  { %v185_v59 = vmul.f32 0.01, %v157_v39  ;;  %v186_v60 = vmul.f32 0.01, %v171_v40  ;;  %vm177_vm6 = vcmp.gt.f32.partialorder %v157_v39, 0.0  ;;  %vm178_vm7 = vcmp.gt.f32.partialorder %v171_v40, 0.0 }
  0xa0   :  { %vm179_vm4 = vcmp.gt.f32.partialorder %v131_v30, 0.0  ;;  %v187_v37 = vmul.f32 0.01, %v131_v30  ;;  %vm180_vm5 = vcmp.gt.f32.partialorder %v145_v31, 0.0  ;;  %v188_v38 = vmul.f32 0.01, %v145_v31 }
  0xa1   :  { %v193_v9 = vsel %vm177_vm6, %v157_v39, %v185_v59  ;;  %v194_v10 = vsel %vm178_vm7, %v171_v40, %v186_v60  ;;  %v2328_v39 = vld [vmem:[#allocation5 + $0x294] sm:$0xf0]  ;;  %v2062_v40 = vld [vmem:[#allocation5 + $0x388] sm:$0xf] }
  0xa2   :  { %v195_v43 = vsel %vm179_vm4, %v131_v30, %v187_v37  ;;  %v196_v44 = vsel %vm180_vm5, %v145_v31, %v188_v38  ;;  %v2078_v30 = vld [vmem:[#allocation5 + $0x3a8] sm:$0xf]  ;;  %v2364_v31 = vld [vmem:[#allocation5 + $0x3b4] sm:$0xf0] }
  0xa3   :  { %v2595_v49 = vpack.c.bf16 %v195_v43, %v191_v42  ;;  %v2597_v50 = vpack.c.bf16 %v196_v44, %v192_v34  ;;  %v1790_v34 = vld [vmem:[#allocation5 + $0x168] sm:$0xf]  ;;  %v2079_v37 = vor.u32 %v2364_v31, %v2078_v30  ;;  %v1663_v42 = vor.u32 %v2260_v33, %v1662_v32  ;;  %v2252_v59 = vld [vmem:[#allocation5 + $0x34] sm:$0xf0]  ;;  %v1840_v31 = vld [vmem:[#allocation5 + $0x1d8] sm:$0xf0] }
  0xa4   :  { %v158_v54 = vpop.f32.mrf.mxu2  ;;  %v172_v55 = vpop.f32.mrf.mxu3  ;;  %v1934_v38 = vld [vmem:[#allocation5 + $0x288] sm:$0xf]  ;;  %v1791_v43 = vor.u32 %v2292_v35, %v1790_v34  ;;  %v2348_v21 = vld [vmem:[#allocation5 + $0x334] sm:$0xf0] }
  0xa5   :  { %v159_v61 = vadd.f32 %v158_v54, %v81_v25  ;;  %v173_v62 = vadd.f32 %v172_v55, %v82_v26  ;;  %989 = vmatmul.bf16.vlgmr.msrb.gmra.mxu0 %v2595_v49  ;;  %1003 = vmatmul.bf16.vlgmr.msrb.gmra.mxu1 %v2597_v50  ;;  %v2095_v25 = vor.u32 %v2368_v19, %v2094_v18  ;;  %v1950_v26 = vld [vmem:[#allocation5 + $0x2a8] sm:$0xf]  ;;  %v2356_v55 = vld [vmem:[#allocation5 + $0x374] sm:$0xf0] }
  0xa6   :  { %1093 = vmatpush.bf16.msrb.mxu0 %v1727_v41  ;;  %1107 = vmatpush.bf16.msrb.mxu1 %v1855_v45  ;;  %v1951_v36 = vor.u32 %v2332_v29, %v1950_v26  ;;  %v2360_v41 = vld [vmem:[#allocation5 + $0x394] sm:$0xf0]  ;;  %v1646_v44 = vld [vmem:[#allocation5 + $0x48] sm:$0xf]  ;;  %v1935_v48 = vor.u32 %v2328_v39, %v1934_v38  ;;  %v2270_v26 = vld [vmem:[#allocation5 + $0xcc] sm:$0xf]  ;;  %v2015_v30 = vor.u32 %v2348_v21, %v2014_v20 }
  0xa7   :  { %vm181_vm8 = vcmp.gt.f32.partialorder %v159_v61, 0.0  ;;  %v189_v4 = vmul.f32 0.01, %v159_v61  ;;  %vm182_vm9 = vcmp.gt.f32.partialorder %v173_v62, 0.0  ;;  %v190_v5 = vmul.f32 0.01, %v173_v62 }
  0xa8   :  { %v2256_v45 = vld [vmem:[#allocation5 + $0x54] sm:$0xf0]  ;;  %v2063_v51 = vor.u32 %v2360_v41, %v2062_v40  ;;  %v2046_v54 = vld [vmem:[#allocation5 + $0x368] sm:$0xf]  ;;  %v2370_v38 = vld [vmem:[#allocation5 + $0x3ec] sm:$0xf] }
  0xa9   :  { %v197_v11 = vsel %vm181_vm8, %v159_v61, %v189_v4  ;;  %v198_v12 = vsel %vm182_vm9, %v173_v62, %v190_v5  ;;  %v1647_v56 = vor.u32 %v2256_v45, %v1646_v44  ;;  %v1758_v60 = vld [vmem:[#allocation5 + $0x128] sm:$0xf]  ;;  %v2284_v61 = vld [vmem:[#allocation5 + $0x134] sm:$0xf0]  ;;  %v1919_v62 = vor.u32 %v2324_v53, %v1918_v52  ;;  %v2112_v39 = vld [vmem:[#allocation5 + $0x3f8] sm:$0xf0] }
  0xaa   :  { %v2601_v15 = vpack.c.bf16 %v197_v11, %v193_v9  ;;  %v2603_v16 = vpack.c.bf16 %v198_v12, %v194_v10  ;;  %1094 = vmatpush.bf16.msrb.mxu0 %v1711_v0  ;;  %1108 = vmatpush.bf16.msrb.mxu1 %v1839_v1  ;;  %v2047_v63 = vor.u32 %v2356_v55, %v2046_v54  ;;  %v1902_v0 = vld [vmem:[#allocation5 + $0x248] sm:$0xf]  ;;  %v2320_v1 = vld [vmem:[#allocation5 + $0x254] sm:$0xf0]  ;;  %v2274_v10 = vld [vmem:[#allocation5 + $0xec] sm:$0xf] }
  0xab   :  { %v1631_v4 = vor.u32 %v2252_v59, %v1630_v58  ;;  %v1759_v5 = vor.u32 %v2284_v61, %v1758_v60  ;;  %v2280_v9 = vld [vmem:[#allocation5 + $0x114] sm:$0xf0]  ;;  %v1728_v11 = vld [vmem:[#allocation5 + $0xf8] sm:$0xf0]  ;;  %v1903_v12 = vor.u32 %v2320_v1, %v1902_v0  ;;  %v1886_v18 = vld [vmem:[#allocation5 + $0x228] sm:$0xf] }
  0xac   :  { %1017 = vmatmul.bf16.vlgmr.msrb.gmra.mxu2 %v2601_v15  ;;  %1031 = vmatmul.bf16.vlgmr.msrb.gmra.mxu3 %v2603_v16  ;;  %v2316_v19 = vld [vmem:[#allocation5 + $0x234] sm:$0xf0]  ;;  %v1870_v32 = vld [vmem:[#allocation5 + $0x208] sm:$0xf]  ;;  %v1696_v45 = vld [vmem:[#allocation5 + $0xb8] sm:$0xf0] }
  0xad   :  { %1121 = vmatpush.bf16.msrb.mxu2 %v1983_v6  ;;  %1135 = vmatpush.bf16.msrb.mxu3 %v2111_v7  ;;  %v1614_v6 = vld [vmem:[#allocation5 + $0x8] sm:$0xf]  ;;  %v2248_v7 = vld [vmem:[#allocation5 + $0x14] sm:$0xf0]  ;;  %v1887_v29 = vor.u32 %v2316_v19, %v1886_v18  ;;  %v2334_v52 = vld [vmem:[#allocation5 + $0x2cc] sm:$0xf] }
  0xae   :  { %1095 = vmatpush.bf16.msrb.mxu0 %v1695_v8  ;;  %1109 = vmatpush.bf16.msrb.mxu1 %v1823_v17  ;;  %v1742_v8 = vld [vmem:[#allocation5 + $0x108] sm:$0xf]  ;;  %v1856_v17 = vld [vmem:[#allocation5 + $0x1f8] sm:$0xf0]  ;;  %v1615_v22 = vor.u32 %v2248_v7, %v1614_v6  ;;  %v2312_v33 = vld [vmem:[#allocation5 + $0x214] sm:$0xf0] }
  0xaf   :  { %v1743_v23 = vor.u32 %v2280_v9, %v1742_v8  ;;  %v1998_v34 = vld [vmem:[#allocation5 + $0x308] sm:$0xf]  ;;  %v2344_v35 = vld [vmem:[#allocation5 + $0x314] sm:$0xf0]  ;;  %v1968_v53 = vld [vmem:[#allocation5 + $0x2d8] sm:$0xf0] }
  0xb0   :  { %v1999_v44 = vor.u32 %v2344_v35, %v1998_v34  ;;  %v2366_v54 = vld [vmem:[#allocation5 + $0x3cc] sm:$0xf]  ;;  %v2096_v55 = vld [vmem:[#allocation5 + $0x3d8] sm:$0xf0] }
  0xb1   :  { %1122 = vmatpush.bf16.msrb.mxu2 %v1967_v24  ;;  %1136 = vmatpush.bf16.msrb.mxu3 %v2095_v25  ;;  %v1731_v24 = vor.u32 %v2274_v10, %v1728_v11  ;;  %v1859_v25 = vor.u32 %v2306_v14, %v1856_v17  ;;  %v2262_v58 = vld [vmem:[#allocation5 + $0x8c] sm:$0xf]  ;;  %v1680_v59 = vld [vmem:[#allocation5 + $0x98] sm:$0xf0]  ;;  %v2083_v11 = vor.u32 %v2362_v2, %v2080_v3  ;;  %v2379_v3 = vld [vmem:[#allocation7 + $0x30] sm:$0xff] }
  0xb2   :  { %1096 = vmatpush.bf16.msrb.mxu0 %v1679_v27  ;;  %1110 = vmatpush.bf16.msrb.mxu1 %v1807_v28  ;;  %v1712_v27 = vld [vmem:[#allocation5 + $0xd8] sm:$0xf0]  ;;  %v2302_v28 = vld [vmem:[#allocation5 + $0x1cc] sm:$0xf] }
  0xb3   :  { %v1715_v40 = vor.u32 %v2270_v26, %v1712_v27  ;;  %v1843_v41 = vor.u32 %v2302_v28, %v1840_v31  ;;  %v2294_v60 = vld [vmem:[#allocation5 + $0x18c] sm:$0xf]  ;;  %v1808_v61 = vld [vmem:[#allocation5 + $0x198] sm:$0xf0] }
  0xb4   :  { %v2330_v0 = vld [vmem:[#allocation5 + $0x2ac] sm:$0xf]  ;;  %v1952_v1 = vld [vmem:[#allocation5 + $0x2b8] sm:$0xf0] }
  0xb5   :  { %1123 = vmatpush.bf16.msrb.mxu2 %v1951_v36  ;;  %1137 = vmatpush.bf16.msrb.mxu3 %v2079_v37  ;;  %v2338_v36 = vld [vmem:[#allocation5 + $0x2ec] sm:$0xf]  ;;  %v1984_v37 = vld [vmem:[#allocation5 + $0x2f8] sm:$0xf0]  ;;  %v1955_v10 = vor.u32 %v2330_v0, %v1952_v1 }
  0xb6   :  { %1045 = vmatmul.bf16.vlgmr.msra.gmra.mxu0 %v2595_v49  ;;  %1059 = vmatmul.bf16.vlgmr.msra.gmra.mxu1 %v2597_v50  ;;  %v2258_v6 = vld [vmem:[#allocation5 + $0x6c] sm:$0xf]  ;;  %v1664_v7 = vld [vmem:[#allocation5 + $0x78] sm:$0xf0] }
  0xb7   :  { %1097 = vmatpush.bf16.msrb.mxu0 %v1663_v42  ;;  %1111 = vmatpush.bf16.msrb.mxu1 %v1791_v43  ;;  %v2266_v42 = vld [vmem:[#allocation5 + $0xac] sm:$0xf]  ;;  %v1871_v43 = vor.u32 %v2312_v33, %v1870_v32  ;;  %v1792_v9 = vld [vmem:[#allocation5 + $0x178] sm:$0xf0]  ;;  %v1667_v18 = vor.u32 %v2258_v6, %v1664_v7 }
  0xb8   :  { %v2290_v8 = vld [vmem:[#allocation5 + $0x16c] sm:$0xf]  ;;  %v2064_v17 = vld [vmem:[#allocation5 + $0x398] sm:$0xf0] }
  0xb9   :  { %1124 = vmatpush.bf16.msrb.mxu2 %v1935_v48  ;;  %1138 = vmatpush.bf16.msrb.mxu3 %v2063_v51  ;;  %v1987_v48 = vor.u32 %v2338_v36, %v1984_v37  ;;  %v2115_v51 = vor.u32 %v2370_v38, %v2112_v39  ;;  %v2358_v14 = vld [vmem:[#allocation5 + $0x38c] sm:$0xf]  ;;  %v1795_v19 = vor.u32 %v2290_v8, %v1792_v9  ;;  %v1648_v21 = vld [vmem:[#allocation5 + $0x58] sm:$0xf0]  ;;  %v2375_v8 = vld [vmem:[#allocation7 + $0x10] sm:$0xff] }
  0xba   :  { %v2254_v20 = vld [vmem:[#allocation5 + $0x4c] sm:$0xf]  ;;  %v1920_v27 = vld [vmem:[#allocation5 + $0x278] sm:$0xf0] }
  0xbb   :  { %1098 = vmatpush.bf16.msrb.mxu0 %v1647_v56  ;;  %1112 = vmatpush.bf16.msrb.mxu1 %v1775_v57  ;;  %v1699_v56 = vor.u32 %v2266_v42, %v1696_v45  ;;  %v1827_v57 = vor.u32 %v2298_v46, %v1824_v47  ;;  %v2322_v26 = vld [vmem:[#allocation5 + $0x26c] sm:$0xf]  ;;  %v1632_v33 = vld [vmem:[#allocation5 + $0x38] sm:$0xf0] }
  0xbc   :  { %1073 = vmatmul.bf16.vlgmr.msra.gmra.mxu2 %v2601_v15  ;;  %1087 = vmatmul.bf16.vlgmr.msra.gmra.mxu3 %v2603_v16  ;;  %v2354_v28 = vld [vmem:[#allocation5 + $0x36c] sm:$0xf]  ;;  %v1760_v35 = vld [vmem:[#allocation5 + $0x138] sm:$0xf0]  ;;  %v1923_v36 = vor.u32 %v2322_v26, %v1920_v27 }
  0xbd   :  { %1125 = vmatpush.bf16.msrb.mxu2 %v1919_v62  ;;  %1139 = vmatpush.bf16.msrb.mxu3 %v2047_v63  ;;  %v1971_v62 = vor.u32 %v2334_v52, %v1968_v53  ;;  %v2099_v63 = vor.u32 %v2366_v54, %v2096_v55  ;;  %v2250_v32 = vld [vmem:[#allocation5 + $0x2c] sm:$0xf]  ;;  %v1904_v39 = vld [vmem:[#allocation5 + $0x258] sm:$0xf0] }
  0xbe   :  { %v2282_v34 = vld [vmem:[#allocation5 + $0x12c] sm:$0xf]  ;;  %v1635_v42 = vor.u32 %v2250_v32, %v1632_v33  ;;  %v1616_v45 = vld [vmem:[#allocation5 + $0x18] sm:$0xf0] }
  0xbf   :  { %1099 = vmatpush.bf16.msrb.mxu0 %v1631_v4  ;;  %1113 = vmatpush.bf16.msrb.mxu1 %v1759_v5  ;;  %v1683_v4 = vor.u32 %v2262_v58, %v1680_v59  ;;  %v1811_v5 = vor.u32 %v2294_v60, %v1808_v61  ;;  %v2318_v38 = vld [vmem:[#allocation5 + $0x24c] sm:$0xf]  ;;  %v1744_v47 = vld [vmem:[#allocation5 + $0x118] sm:$0xf0] }
  0xc0   :  { %v2278_v46 = vld [vmem:[#allocation5 + $0x10c] sm:$0xf]  ;;  %v1888_v53 = vld [vmem:[#allocation5 + $0x238] sm:$0xf0] }
  0xc1   :  { %1126 = vmatpush.bf16.msrb.mxu2 %v1903_v12  ;;  %1140 = vmatpush.bf16.msrb.mxu3 %v2031_v13  ;;  %v2326_v12 = vld [vmem:[#allocation5 + $0x28c] sm:$0xf]  ;;  %v1936_v13 = vld [vmem:[#allocation5 + $0x298] sm:$0xf0] }
  0xc2   :  { %v2314_v52 = vld [vmem:[#allocation5 + $0x22c] sm:$0xf]  ;;  %v2016_v55 = vld [vmem:[#allocation5 + $0x338] sm:$0xf0] }
  0xc3   :  { %1100 = vmatpush.bf16.msrb.mxu0 %v1615_v22  ;;  %1114 = vmatpush.bf16.msrb.mxu1 %v1743_v23  ;;  %v2286_v22 = vld [vmem:[#allocation5 + $0x14c] sm:$0xf]  ;;  %v1776_v23 = vld [vmem:[#allocation5 + $0x158] sm:$0xf0]  ;;  %v1891_v59 = vor.u32 %v2314_v52, %v1888_v53 }
  0xc4   :  { %v1779_v31 = vor.u32 %v2286_v22, %v1776_v23  ;;  %v2346_v54 = vld [vmem:[#allocation5 + $0x32c] sm:$0xf]  ;;  %v2380_v58 = vld [vmem:[#allocation7 + $0x38] sm:$0xff] }
  0xc5   :  { %1127 = vmatpush.bf16.msrb.mxu2 %v1887_v29  ;;  %1141 = vmatpush.bf16.msrb.mxu3 %v2015_v30  ;;  %v2048_v29 = vld [vmem:[#allocation5 + $0x378] sm:$0xf0]  ;;  %v1651_v30 = vor.u32 %v2254_v20, %v1648_v21  ;;  %v2019_v60 = vor.u32 %v2346_v54, %v2016_v55  ;;  %v2310_v61 = vld [vmem:[#allocation5 + $0x20c] sm:$0xf] }
  0xc6   :  { %1101 = vmatmul.bf16.vlgmr.msrb.gmra.mxu0 %v2595_v49  ;;  %1115 = vmatmul.bf16.vlgmr.msrb.gmra.mxu1 %v2597_v50  ;;  %v2051_v37 = vor.u32 %v2354_v28, %v2048_v29  ;;  %v2000_v0 = vld [vmem:[#allocation5 + $0x318] sm:$0xf0]  ;;  %v2386_v9 = vld [vmem:[#allocation7 + $0x68] sm:$0xff] }
  0xc7   :  { %1149 = vmatpush.bf16.msra.mxu0 %v1731_v24  ;;  %1163 = vmatpush.bf16.msra.mxu1 %v1859_v25  ;;  %v1939_v24 = vor.u32 %v2326_v12, %v1936_v13  ;;  %v2067_v25 = vor.u32 %v2358_v14, %v2064_v17  ;;  %v2376_v6 = vld [vmem:[#allocation7 + $0x18] sm:$0xff]  ;;  %v2622_v14 = vld [vmem:[%s2638_s4] sm:$0xf]  ;;  %v2382_v20 = vld [vmem:[#allocation7 + $0x48] sm:$0xff] }
  0xc8   :  { %v2388_v7 = vld [vmem:[#allocation7 + $0x78] sm:$0xff]  ;;  %v2383_v17 = vld [vmem:[#allocation7 + $0x50] sm:$0xff]  ;;  %v2394_v21 = vld [vmem:[#allocation7 + $0xa8] sm:$0xff] }
  0xc9   :  { %1128 = vmatpush.bf16.msrb.mxu2 %v1871_v43  ;;  %1142 = vmatpush.bf16.msrb.mxu3 %v1999_v44  ;;  %v1763_v43 = vor.u32 %v2282_v34, %v1760_v35  ;;  %v2246_v44 = vld [vmem:[#allocation5 + $0xc] sm:$0xf]  ;;  %v2391_v34 = vld [vmem:[#allocation7 + $0x90] sm:$0xff] }
  0xcb   :  { %1150 = vmatpush.bf16.msra.mxu0 %v1715_v40  ;;  %1164 = vmatpush.bf16.msra.mxu1 %v1843_v41  ;;  %v2350_v40 = vld [vmem:[#allocation5 + $0x34c] sm:$0xf]  ;;  %v2032_v41 = vld [vmem:[#allocation5 + $0x358] sm:$0xf0] }
  0xcc   :  { %1129 = vmatmul.bf16.vlgmr.msrb.gmra.mxu2 %v2601_v15  ;;  %1143 = vmatmul.bf16.vlgmr.msrb.gmra.mxu3 %v2603_v16 }
  0xcd   :  { %1177 = vmatpush.bf16.msra.mxu2 %v1987_v48  ;;  %1191 = vmatpush.bf16.msra.mxu3 %v2115_v51  ;;  %v1907_v48 = vor.u32 %v2318_v38, %v1904_v39  ;;  %v2035_v51 = vor.u32 %v2350_v40, %v2032_v41  ;;  %v334_v39 = vperm.slane %v2622_v14, 1 }
  0xcf   :  { %1151 = vmatpush.bf16.msra.mxu0 %v1699_v56  ;;  %1165 = vmatpush.bf16.msra.mxu1 %v1827_v57  ;;  %v1619_v56 = vor.u32 %v2246_v44, %v1616_v45  ;;  %v1747_v57 = vor.u32 %v2278_v46, %v1744_v47 }
  0xd1   :  { %1178 = vmatpush.bf16.msra.mxu2 %v1971_v62  ;;  %1192 = vmatpush.bf16.msra.mxu3 %v2099_v63  ;;  %v1872_v62 = vld [vmem:[#allocation5 + $0x218] sm:$0xf0]  ;;  %v2342_v63 = vld [vmem:[#allocation5 + $0x30c] sm:$0xf] }
  0xd2   :  { %v1875_v1 = vor.u32 %v2310_v61, %v1872_v62  ;;  %v2003_v2 = vor.u32 %v2342_v63, %v2000_v0  ;;  %v2402_v62 = vld [vmem:[#allocation7 + $0xe8] sm:$0xff] }
  0xd3   :  { %1152 = vmatpush.bf16.msra.mxu0 %v1683_v4  ;;  %1166 = vmatpush.bf16.msra.mxu1 %v1811_v5  ;;  %v2378_v4 = vld [vmem:[#allocation7 + $0x28] sm:$0xff]  ;;  %v2377_v5 = vld [vmem:[#allocation7 + $0x20] sm:$0xff] }
  0xd5   :  { %1179 = vmatpush.bf16.msra.mxu2 %v1955_v10  ;;  %1193 = vmatpush.bf16.msra.mxu3 %v2083_v11  ;;  %v2384_v10 = vld [vmem:[#allocation7 + $0x58] sm:$0xff] }
  0xd6   :  { %v2396_v11 = vld [vmem:[#allocation7 + $0xb8] sm:$0xff] }
  0xd7   :  { %1153 = vmatpush.bf16.msra.mxu0 %v1667_v18  ;;  %1167 = vmatpush.bf16.msra.mxu1 %v1795_v19  ;;  %v2395_v18 = vld [vmem:[#allocation7 + $0xb0] sm:$0xff]  ;;  %v333_v19 = vperm.slane %v2622_v14, 0 }
  0xd9   :  { %1180 = vmatpush.bf16.msra.mxu2 %v1939_v24  ;;  %1194 = vmatpush.bf16.msra.mxu3 %v2067_v25  ;;  %v2381_v24 = vld [vmem:[#allocation7 + $0x40] sm:$0xff] }
  0xda   :  { %v2393_v25 = vld [vmem:[#allocation7 + $0xa0] sm:$0xff] }
  0xdb   :  { %1154 = vmatpush.bf16.msra.mxu0 %v1651_v30  ;;  %1168 = vmatpush.bf16.msra.mxu1 %v1779_v31  ;;  %v2392_v30 = vld [vmem:[#allocation7 + $0x98] sm:$0xff] }
  0xdd   :  { %1181 = vmatpush.bf16.msra.mxu2 %v1923_v36  ;;  %1195 = vmatpush.bf16.msra.mxu3 %v2051_v37 }
  0xdf   :  { %1155 = vmatpush.bf16.msra.mxu0 %v1635_v42  ;;  %1169 = vmatpush.bf16.msra.mxu1 %v1763_v43  ;;  %v2390_v42 = vld [vmem:[#allocation7 + $0x88] sm:$0xff] }
  0xe1   :  { %1182 = vmatpush.bf16.msra.mxu2 %v1907_v48  ;;  %1196 = vmatpush.bf16.msra.mxu3 %v2035_v51  ;;  %v2389_v48 = vld [vmem:[#allocation7 + $0x80] sm:$0xff]  ;;  %v2404_v51 = vld [vmem:[#allocation7 + $0xf8] sm:$0xff] }
  0xe3   :  { %1156 = vmatpush.bf16.msra.mxu0 %v1619_v56  ;;  %1170 = vmatpush.bf16.msra.mxu1 %v1747_v57 }
  0xe5   :  { %1183 = vmatpush.bf16.msra.mxu2 %v1891_v59  ;;  %1197 = vmatpush.bf16.msra.mxu3 %v2019_v60 }
  0xe6   :  { %1157 = vmatmul.bf16.vlgmr.msra.gmra.mxu0 %v2595_v49  ;;  %1171 = vmatmul.bf16.vlgmr.msra.gmra.mxu1 %v2597_v50  ;;  %v2387_v49 = vld [vmem:[#allocation7 + $0x70] sm:$0xff]  ;;  %v2374_v50 = vld [vmem:[#allocation7 + $0x8] sm:$0xff] }
  0xe7   :  { %1493 = vmatpush.bf16.msrb.mxu0 %v2380_v58  ;;  %1507 = vmatpush.bf16.msrb.mxu1 %v2388_v7  ;;  %v2403_v58 = vld [vmem:[#allocation7 + $0xf0] sm:$0xff] }
  0xe9   :  { %1184 = vmatpush.bf16.msra.mxu2 %v1875_v1  ;;  %1198 = vmatpush.bf16.msra.mxu3 %v2003_v2 }
  0xeb   :  { %1494 = vmatpush.bf16.msrb.mxu0 %v2379_v3  ;;  %1508 = vmatpush.bf16.msrb.mxu1 %v2387_v49 }
  0xec   :  { %1185 = vmatmul.bf16.vlgmr.msra.gmra.mxu2 %v2601_v15  ;;  %1199 = vmatmul.bf16.vlgmr.msra.gmra.mxu3 %v2603_v16  ;;  %v2373_v15 = vld [vmem:[#allocation7] sm:$0xff] }
  0xed   :  { %v2385_v16 = vld [vmem:[#allocation7 + $0x60] sm:$0xff]  ;;  %1521 = vmatpush.bf16.msrb.mxu2 %v2396_v11  ;;  %1535 = vmatpush.bf16.msrb.mxu3 %v2404_v51 }
  0xef   :  { %1495 = vmatpush.bf16.msrb.mxu0 %v2378_v4  ;;  %1509 = vmatpush.bf16.msrb.mxu1 %v2386_v9 }
  0xf1   :  { %1522 = vmatpush.bf16.msrb.mxu2 %v2395_v18  ;;  %1536 = vmatpush.bf16.msrb.mxu3 %v2403_v58 }
  0xf3   :  { %1496 = vmatpush.bf16.msrb.mxu0 %v2377_v5  ;;  %1510 = vmatpush.bf16.msrb.mxu1 %v2385_v16  ;;  %v335_v5 = vperm.slane %v2622_v14, 2 }
  0xf5   :  { %1523 = vmatpush.bf16.msrb.mxu2 %v2394_v21  ;;  %1537 = vmatpush.bf16.msrb.mxu3 %v2402_v62 }
  0xf7   :  { %1497 = vmatpush.bf16.msrb.mxu0 %v2376_v6  ;;  %1511 = vmatpush.bf16.msrb.mxu1 %v2384_v10  ;;  %v2401_v6 = vld [vmem:[#allocation7 + $0xe0] sm:$0xff] }
  0xf9   :  { %1524 = vmatpush.bf16.msrb.mxu2 %v2393_v25  ;;  %1538 = vmatpush.bf16.msrb.mxu3 %v2401_v6 }
  0xfb   :  { %1498 = vmatpush.bf16.msrb.mxu0 %v2375_v8  ;;  %1512 = vmatpush.bf16.msrb.mxu1 %v2383_v17 }
  0xfd   :  { %1525 = vmatpush.bf16.msrb.mxu2 %v2392_v30 }
  0xff   :  { %1499 = vmatpush.bf16.msrb.mxu0 %v2374_v50  ;;  %1513 = vmatpush.bf16.msrb.mxu1 %v2382_v20 }
 0x101   :  { %1526 = vmatpush.bf16.msrb.mxu2 %v2391_v34 }
 0x103   :  { %1500 = vmatpush.bf16.msrb.mxu0 %v2373_v15  ;;  %1514 = vmatpush.bf16.msrb.mxu1 %v2381_v24  ;;  %v2400_v15 = vld [vmem:[#allocation7 + $0xd8] sm:$0xff] }
 0x104   :  { %1539 = vmatpush.bf16.msrb.mxu3 %v2400_v15 }
 0x105   :  { %1527 = vmatpush.bf16.msrb.mxu2 %v2390_v42 }
 0x109   :  { %1528 = vmatpush.bf16.msrb.mxu2 %v2389_v48 }
 0x122   :  { %v990_v12 = vpop.f32.mrf.mxu0  ;;  %v1004_v13 = vpop.f32.mrf.mxu1 }
 0x123   :  { %v991_v23 = vadd.f32 %v990_v12, %v333_v19 }
 0x125   :  { %v1005_v29 = vadd.f32 %v1004_v13, %v991_v23 }
 0x12a   :  { %v992_v22 = vpop.f32.mrf.mxu0  ;;  %v1006_v26 = vpop.f32.mrf.mxu1 }
 0x12b   :  { %v993_v31 = vadd.f32 %v992_v22, %v333_v19  ;;  %v2399_v19 = vld [vmem:[#allocation7 + $0xd0] sm:$0xff]  ;;  %v2398_v22 = vld [vmem:[#allocation7 + $0xc8] sm:$0xff] }
 0x12c   :  { %1540 = vmatpush.bf16.msrb.mxu3 %v2399_v19 }
 0x12d   :  { %v1007_v35 = vadd.f32 %v1006_v26, %v993_v31 }
 0x12f   :  { %v1018_v27 = vpop.f32.mrf.mxu2  ;;  %v1032_v28 = vpop.f32.mrf.mxu3 }
 0x130   :  { %v1019_v32 = vadd.f32 %v1018_v27, %v1005_v29  ;;  %1541 = vmatpush.bf16.msrb.mxu3 %v2398_v22 }
 0x132   :  { %v1033_v36 = vadd.f32 %v1032_v28, %v1019_v32  ;;  %v2397_v28 = vld [vmem:[#allocation7 + $0xc0] sm:$0xff] }
 0x133   :  { %v1046_v33 = vpop.f32.mrf.mxu0  ;;  %v1060_v40 = vpop.f32.mrf.mxu1 }
 0x134   :  { %v1213_v43 = vmul.f32 0.01, %v1033_v36  ;;  %vm1205_vm10 = vcmp.gt.f32.partialorder %v1033_v36, 0.0  ;;  %v1047_v46 = vadd.f32 %v1046_v33, %v334_v39  ;;  %1542 = vmatpush.bf16.msrb.mxu3 %v2397_v28 }
 0x136   :  { %v1221_v52 = vsel %vm1205_vm10, %v1033_v36, %v1213_v43  ;;  %v1061_v57 = vadd.f32 %v1060_v40, %v1047_v46 }
 0x137   :  { %v1020_v37 = vpop.f32.mrf.mxu2  ;;  %v1034_v38 = vpop.f32.mrf.mxu3 }
 0x138   :  { %v1021_v41 = vadd.f32 %v1020_v37, %v1007_v35  ;;  %v336_v37 = vperm.slane %v2622_v14, 3 }
 0x13a   :  { %v1035_v44 = vadd.f32 %v1034_v38, %v1021_v41 }
 0x13b   :  { %v1048_v45 = vpop.f32.mrf.mxu0  ;;  %v1062_v60 = vpop.f32.mrf.mxu1 }
 0x13c   :  { %vm1209_vm11 = vcmp.gt.f32.partialorder %v1035_v44, 0.0  ;;  %v1217_v47 = vmul.f32 0.01, %v1035_v44  ;;  %v1049_v59 = vadd.f32 %v1048_v45, %v334_v39 }
 0x13e   :  { %v1225_v53 = vsel %vm1209_vm11, %v1035_v44, %v1217_v47  ;;  %v1063_v0 = vadd.f32 %v1062_v60, %v1049_v59  ;;  %v2528_v59 = vmov 4  }
 0x13f   :  { %v1229_v54 = vpack.c.bf16 %v1225_v53, %v1221_v52  ;;  %v1074_v55 = vpop.f32.mrf.mxu2  ;;  %v1088_v56 = vpop.f32.mrf.mxu3  ;;  %2416 = vset.pattern.permute.xlu1 %v2528_v59  ;;  %2417 = vset.pattern.permute.xlu0 %v2528_v59 }
 0x140   :  { %v1075_v61 = vadd.f32 %v1074_v55, %v1061_v57 }
 0x141   :  { %1501 = vmatmul.bf16.vlgmr.msrb.gmra.mxu0 %v1229_v54 }
 0x142   :  { %v1089_v1 = vadd.f32 %v1088_v56, %v1075_v61  ;;  %v2418_v61 = vld [vmem:[%s2640_s6] ss:$0 sm:$0xff]  ;;  %s2529_s6 = smov [#allocation8]  }
 0x143   :  { %v1102_v63 = vpop.f32.mrf.mxu0  ;;  %v1116_v49 = vpop.f32.mrf.mxu1  ;;  %s1580_s22 = sshll.u32 %s2529_s6, 4  ;;  %s1581_s22 = int_to_ptr.vmem [resolvable:$true] %s1580_s22 }
 0x144   :  { %v1214_v7 = vmul.f32 0.01, %v1089_v1  ;;  %vm1206_vm12 = vcmp.gt.f32.partialorder %v1089_v1, 0.0  ;;  %v1103_v9 = vadd.f32 %v1102_v63, %v335_v5  ;;  %v1549_v63 = vlaneseq }
 0x146   :  { %v1222_v16 = vsel %vm1206_vm12, %v1089_v1, %v1214_v7  ;;  %v1117_v18 = vadd.f32 %v1116_v49, %v1103_v9 }
 0x147   :  { %v1076_v2 = vpop.f32.mrf.mxu2  ;;  %v1090_v3 = vpop.f32.mrf.mxu3 }
 0x148   :  { %v1077_v4 = vadd.f32 %v1076_v2, %v1063_v0  ;;  %v1550_v2 = vand.u32 127, %v1549_v63 }
 0x14a   :  { %v1091_v8 = vadd.f32 %v1090_v3, %v1077_v4  ;;  %vm1551_vm2 = vcmp.lt.s32.totalorder %v1550_v2, 4 }
 0x14b   :  { %v1104_v12 = vpop.f32.mrf.mxu0  ;;  %v1118_v23 = vpop.f32.mrf.mxu1 }
 0x14c   :  { %vm1210_vm13 = vcmp.gt.f32.partialorder %v1091_v8, 0.0  ;;  %v1218_v50 = vmul.f32 0.01, %v1091_v8  ;;  %v1105_v20 = vadd.f32 %v1104_v12, %v335_v5 }
 0x14e   :  { %v1226_v10 = vsel %vm1210_vm13, %v1091_v8, %v1218_v50  ;;  %v1119_v24 = vadd.f32 %v1118_v23, %v1105_v20 }
 0x14f   :  { %v1230_v11 = vpack.c.bf16 %v1226_v10, %v1222_v16  ;;  %v1130_v13 = vpop.f32.mrf.mxu2  ;;  %v1144_v17 = vpop.f32.mrf.mxu3 }
 0x150   :  { %v1131_v21 = vadd.f32 %v1130_v13, %v1117_v18 }
 0x151   :  { %1515 = vmatmul.bf16.vlgmr.msrb.gmra.mxu1 %v1230_v11 }
 0x152   :  { %v1145_v25 = vadd.f32 %v1144_v17, %v1131_v21 }
 0x154   :  { %v1215_v30 = vmul.f32 0.01, %v1145_v25  ;;  %vm1207_vm14 = vcmp.gt.f32.partialorder %v1145_v25, 0.0 }
 0x156   :  { %v1223_v33 = vsel %vm1207_vm14, %v1145_v25, %v1215_v30 }
 0x157   :  { %v1132_v26 = vpop.f32.mrf.mxu2  ;;  %v1146_v29 = vpop.f32.mrf.mxu3 }
 0x158   :  { %v1133_v27 = vadd.f32 %v1132_v26, %v1119_v24 }
 0x15a   :  { %v1147_v31 = vadd.f32 %v1146_v29, %v1133_v27 }
 0x15c   :  { %vm1211_vm15 = vcmp.gt.f32.partialorder %v1147_v31, 0.0  ;;  %v1219_v32 = vmul.f32 0.01, %v1147_v31 }
 0x15e   :  { %v1227_v34 = vsel %vm1211_vm15, %v1147_v31, %v1219_v32 }
 0x15f   :  { %v1231_v35 = vpack.c.bf16 %v1227_v34, %v1223_v33 }
 0x161   :  { %1529 = vmatmul.bf16.vlgmr.msrb.gmra.mxu2 %v1231_v35 }
 0x163   :  { %v1158_v36 = vpop.f32.mrf.mxu0  ;;  %v1172_v38 = vpop.f32.mrf.mxu1 }
 0x164   :  { %v1159_v39 = vadd.f32 %v1158_v36, %v336_v37 }
 0x166   :  { %v1173_v43 = vadd.f32 %v1172_v38, %v1159_v39 }
 0x16b   :  { %v1160_v40 = vpop.f32.mrf.mxu0  ;;  %v1174_v46 = vpop.f32.mrf.mxu1 }
 0x16c   :  { %v1161_v44 = vadd.f32 %v1160_v40, %v336_v37 }
 0x16e   :  { %v1175_v47 = vadd.f32 %v1174_v46, %v1161_v44 }
 0x16f   :  { %v1186_v41 = vpop.f32.mrf.mxu2  ;;  %v1200_v42 = vpop.f32.mrf.mxu3 }
 0x170   :  { %v1187_v45 = vadd.f32 %v1186_v41, %v1173_v43 }
 0x172   :  { %v1201_v48 = vadd.f32 %v1200_v42, %v1187_v45 }
 0x174   :  { %v1216_v54 = vmul.f32 0.01, %v1201_v48  ;;  %vm1208_vm0 = vcmp.gt.f32.partialorder %v1201_v48, 0.0 }
 0x176   :  { %v1224_v14 = vsel %vm1208_vm0, %v1201_v48, %v1216_v54 }
 0x177   :  { %v1188_v51 = vpop.f32.mrf.mxu2  ;;  %v1202_v53 = vpop.f32.mrf.mxu3 }
 0x178   :  { %v1189_v52 = vadd.f32 %v1188_v51, %v1175_v47 }
 0x17a   :  { %v1203_v55 = vadd.f32 %v1202_v53, %v1189_v52 }
 0x17c   :  { %vm1212_vm1 = vcmp.gt.f32.partialorder %v1203_v55, 0.0  ;;  %v1220_v56 = vmul.f32 0.01, %v1203_v55 }
 0x17e   :  { %v1228_v57 = vsel %vm1212_vm1, %v1203_v55, %v1220_v56 }
 0x17f   :  { %v1232_v58 = vpack.c.bf16 %v1228_v57, %v1224_v14 }
 0x181   :  { %1543 = vmatmul.bf16.vlgmr.msrb.gmra.mxu3 %v1232_v58 }
 0x1be   :  { %v1502_v60 = vpop.f32.mrf.mxu0 }
 0x1bf   :  { %v1503_v1 = vadd.f32 %v2418_v61, %v1502_v60 }
 0x1c6   :  { %v1504_v5 = vpop.f32.mrf.mxu0 }
 0x1c7   :  { %v1505_v49 = vadd.f32 %v2418_v61, %v1504_v5 }
 0x1ce   :  { %v1516_v62 = vpop.f32.mrf.mxu1 }
 0x1cf   :  { %v1517_v3 = vadd.f32 %v1516_v62, %v1503_v1 }
 0x1d6   :  { %v1518_v8 = vpop.f32.mrf.mxu1 }
 0x1d7   :  { %v1519_v15 = vadd.f32 %v1518_v8, %v1505_v49 }
 0x1e4   :  { %v1530_v0 = vpop.f32.mrf.mxu2 }
 0x1e5   :  { %v1531_v4 = vadd.f32 %v1530_v0, %v1517_v3 }
 0x1ec   :  { %v1532_v9 = vpop.f32.mrf.mxu2 }
 0x1ed   :  { %v1533_v16 = vadd.f32 %v1532_v9, %v1519_v15 }
 0x204   :  { %v1544_v6 = vpop.f32.mrf.mxu3 }
 0x205   :  { %v1545_v7 = vadd.f32 %v1544_v6, %v1531_v4 }
 0x207   :  { %1564 = vperm.xlu1 %2416, %v1545_v7   ;;  %v1552_v50 = vsel %vm1551_vm2, %v1545_v7, 0.0 }
 0x208   :  { %1554 = vadd.xlane.f32.xlu0 %v1552_v50 }
 0x20c   :  { %v1546_v10 = vpop.f32.mrf.mxu3 }
 0x20d   :  { %v1547_v11 = vadd.f32 %v1546_v10, %v1533_v16 }
 0x20f   :  { %1569 = vperm.xlu1 %2416, %v1547_v11   ;;  %v1553_v12 = vsel %vm1551_vm2, %v1547_v11, 0.0 }
 0x210   :  { %1556 = vadd.xlane.f32.xlu0 %v1553_v12 }
 0x279   :  { %v1565_v18 = vpop.permute.xlu1 %1564 }
 0x27b   :  { %v1555_v13 = vpop.xlane.xlu0 %1554 }
 0x27c   :  { %v1558_v17 = vmul.f32 0.25, %v1555_v13 }
 0x27e   :  { %v1560_v19 = vsub.f32 %v1545_v7, %v1558_v17 }
 0x280   :  { %v1572_v20 = vadd.f32 %v1565_v18, %v1560_v19 }
 0x281   :  { %v1570_v24 = vpop.permute.xlu1 %1569 }
 0x282   :  { %1574 = vst [vmem:[#allocation8] sm:$0xff] %v1572_v20 }
 0x283   :  { %v1557_v21 = vpop.xlane.xlu0 %1556 }
 0x284   :  { %v1559_v22 = vmul.f32 0.25, %v1557_v21 }
 0x286   :  { %v1561_v23 = vsub.f32 %v1547_v11, %v1559_v22 }
 0x288   :  { %v1573_v25 = vadd.f32 %v1570_v24, %v1561_v23 }
 0x28a   :  { %1575 = vst [vmem:[#allocation8 + $0x8] sm:$0xff] %v1573_v25 }
 0x28b   :  { %1588 = dma.vmem_to_hbm [thread:$0]  %s1581_s22, 256, %s1583_s25, [#allocation4], %s2530_s26, %s2530_s26, %s2531_s27  }
 0x28c   :  { %2519 = dma.done.wait [#allocation4], 256  }
 0x28d   :  { %2520 = vsyncadd [#allocation4], 4294967040 }
 0x28e   :  { %1593 = vsyncpa [#allocation3], 1 }
 0x28f   :  { %1594 = vsyncpa [#allocation6], 1 }
 0x290   :  { %1595 = vsyncpa [#allocation4], 1 }

</bundles_post_ra>
